<compile_context>
chip_gen: v7x
topology: tpu7x:2x2x1
jax: 0.10.0
libtpu: 0.0.40
codegen_flags: <defaults>
</compile_context>

<pallas_src>
import functools

import jax
import jax.numpy as jnp
import numpy as np
from jax.experimental import pallas as pl
from jax.experimental.pallas import tpu as pltpu

_EPS = 1e-5   # nn.BatchNorm1d default eps
_PAD = 8      # sublane-aligned halo for the k=3 conv scratch buffer


# ------------------------------ fused kernel -------------------------------

def _bottleneck_kernel(*refs, stride, has_proj, compute_dtype):
    (x_ref, w1_ref, g1_ref, b1_ref,
     w2_ref, g2_ref, b2_ref,
     w3_ref, g3_ref, b3_ref) = refs[:10]
    pos = 10
    if has_proj:
        wsc_ref, gsc_ref, bsc_ref = refs[pos], refs[pos + 1], refs[pos + 2]
        pos += 3
    if stride > 1:
        sel_ref = refs[pos]          # (B*Lout, B*L) 0/1 row-selection matrix
        pos += 1
    o_ref, hpad_ref = refs[pos], refs[pos + 1]

    B, L, Cin = x_ref.shape
    Cmid = w1_ref.shape[1]
    Cout = w3_ref.shape[1]
    Lout = o_ref.shape[1]
    M, Mo = B * L, B * Lout
    f32 = jnp.float32

    def mm(a, w):                    # MXU matmul; operands optionally bf16, acc f32
        return jnp.dot(a.astype(compute_dtype), w.astype(compute_dtype),
                       preferred_element_type=f32)

    def bn(y2d, g_ref, b_ref):       # training-mode BN over all (B*L) rows, per channel
        mean = jnp.mean(y2d, axis=0, keepdims=True)
        var = jnp.mean(jnp.square(y2d - mean), axis=0, keepdims=True)
        return (y2d - mean) * jax.lax.rsqrt(var + _EPS) * g_ref[...] + b_ref[...]

    def maybe_subsample(v2d):        # (B*L, C) -> (B*Lout, C): keep rows l*stride / batch
        return v2d if stride == 1 else mm(sel_ref[...], v2d)

    x2d = x_ref[...].astype(f32).reshape(M, Cin)

    # --- conv1 (1x1) -> bn1 -> relu ----------------------------------------
    h = jnp.maximum(bn(mm(x2d, w1_ref[...]), g1_ref, b1_ref), 0.0)        # (M, Cmid)

    # --- conv2 (k=3, pad=1, stride) -> bn2 -> relu --------------------------
    # bn1/relu output goes into a zero-padded VMEM scratch; the 3 taps are 3 shifted
    # (B, L, Cmid) windows of it, each feeding one accumulated matmul (no im2col).
    hpad_ref[...] = jnp.zeros_like(hpad_ref)
    hpad_ref[:, _PAD:_PAD + L, :] = h.reshape(B, L, Cmid)
    y2 = None
    for t in range(3):               # tap t reads h[l + t - 1], zero outside [0, L)
        win = hpad_ref[:, _PAD - 1 + t:_PAD - 1 + t + L, :].reshape(M, Cmid)
        part = mm(win, w2_ref[t])
        y2 = part if y2 is None else y2 + part
    h = jnp.maximum(bn(maybe_subsample(y2), g2_ref, b2_ref), 0.0)         # (Mo, Cmid)

    # --- conv3 (1x1) -> bn3 --------------------------------------------------
    y3 = bn(mm(h, w3_ref[...]), g3_ref, b3_ref)                            # (Mo, Cout)

    # --- shortcut ------------------------------------------------------------
    if has_proj:
        sc = bn(mm(maybe_subsample(x2d), wsc_ref[...]), gsc_ref, bsc_ref)
    else:
        sc = x2d                      # identity: stride == 1 and Cin == Cout

    o_ref[...] = jnp.maximum(y3 + sc, 0.0).reshape(B, Lout, Cout).astype(o_ref.dtype)


def bottleneck_forward_pallas(params, x, *, stride, compute_dtype=jnp.float32):
    """x: (B, L, Cin) NLC layout, float32. Returns (B, Lout, Cout)."""
    B, L, Cin = x.shape
    Cmid = params["w1"].shape[2]
    Cout = params["w3"].shape[2]
    Lout = (L - 1) // stride + 1
    has_proj = "wsc" in params
    assert has_proj or (stride == 1 and Cin == Cout)
    # Keep L (and Lout) multiples of 8 so in-kernel (B, L, C) <-> (B*L, C) reshapes are
    # layout-trivial on the (8, 128) vreg tiling.
    assert L % 8 == 0 and Lout % 8 == 0, "pick L a multiple of 8 * stride"

    f32 = jnp.float32

    def r2(v):                       # (C,) -> (1, C) broadcastable against (rows, C)
        return v.reshape(1, -1).astype(f32)

    inputs = [x.astype(f32),
              params["w1"][0].astype(f32), r2(params["g1"]), r2(params["b1"]),
              params["w2"].astype(f32),    r2(params["g2"]), r2(params["b2"]),
              params["w3"][0].astype(f32), r2(params["g3"]), r2(params["b3"])]
    if has_proj:
        inputs += [params["wsc"][0].astype(f32), r2(params["gsc"]), r2(params["bsc"])]
    if stride > 1:
        # Tiny 0/1 selection matrix: out row (b, l) <- in row (b, l*stride). Applied as a
        # matmul on the MXU (safe, no strided sublane ops). Fine at these sizes; for very
        # long L replace with a strided ref read.
        pick = jnp.arange(Lout) * stride
        sel = (pick[:, None] == jnp.arange(L)[None, :]).astype(f32)       # (Lout, L)
        inputs.append(jnp.kron(jnp.eye(B, dtype=f32), sel))               # (B*Lout, B*L)

    kernel = functools.partial(_bottleneck_kernel, stride=stride,
                               has_proj=has_proj, compute_dtype=compute_dtype)
    vmem = pl.BlockSpec(memory_space=pltpu.MemorySpace.VMEM)
    return pl.pallas_call(
        kernel,
        out_shape=jax.ShapeDtypeStruct((B, Lout, Cout), f32),
        in_specs=[vmem] * len(inputs),
        out_specs=vmem,
        scratch_shapes=[pltpu.VMEM((B, L + 2 * _PAD, Cmid), jnp.float32)],
    )(*inputs)


# --------------------------- pure-JAX reference -----------------------------

def _bn_train_ref(x, gamma, beta):
    mean = x.mean(axis=(0, 1), keepdims=True)
    var = ((x - mean) ** 2).mean(axis=(0, 1), keepdims=True)
    return ((x - mean) * jax.lax.rsqrt(var + _EPS)
            * gamma.reshape(1, 1, -1) + beta.reshape(1, 1, -1))


def _conv1d_ref(x, w, stride=1, padding=0):
    K = w.shape[0]
    xp = jnp.pad(x, ((0, 0), (padding, padding), (0, 0)))
    Lout = (x.shape[1] + 2 * padding - K) // stride + 1
    cols = [xp[:, t:t + (Lout - 1) * stride + 1:stride, :] for t in range(K)]
    return jnp.einsum("blkc,kco->blo", jnp.stack(cols, axis=2), w)


def bottleneck_forward_ref(params, x, *, stride):
    h = _conv1d_ref(x, params["w1"])
    h = jax.nn.relu(_bn_train_ref(h, params["g1"], params["b1"]))
    h = _conv1d_ref(h, params["w2"], stride=stride, padding=1)
    h = jax.nn.relu(_bn_train_ref(h, params["g2"], params["b2"]))
    h = _conv1d_ref(h, params["w3"])
    h = _bn_train_ref(h, params["g3"], params["b3"])
    if "wsc" in params:
        sc = _conv1d_ref(x, params["wsc"], stride=stride)
        sc = _bn_train_ref(sc, params["gsc"], params["bsc"])
    else:
        sc = x
    return jax.nn.relu(h + sc)


# ------------------------------- parameters ---------------------------------

def init_bottleneck_params(key, in_chan, out_chan, stride):
    if out_chan // in_chan == 4:
        mid_chan = in_chan
    elif out_chan // in_chan == 2:
        mid_chan = in_chan // 2
    elif out_chan == in_chan:
        mid_chan = in_chan // 4
    else:
        raise ValueError("unsupported in_chan/out_chan ratio for BottleneckBlock")

    keys = iter(jax.random.split(key, 16))

    def conv_w(k, cin, cout):        # stored (K, Cin, Cout) = torch (Cout, Cin, K).T
        std = (2.0 / (cin * k)) ** 0.5
        return std * jax.random.normal(next(keys), (k, cin, cout), jnp.float32)

    def bn_p(c):                     # random affine so the BN affine path is exercised
        g = 0.5 + jax.random.uniform(next(keys), (c,), jnp.float32)
        b = 0.1 * jax.random.normal(next(keys), (c,), jnp.float32)
        return g, b

    p = {"w1": conv_w(1, in_chan, mid_chan)}
    p["g1"], p["b1"] = bn_p(mid_chan)
    p["w2"] = conv_w(3, mid_chan, mid_chan)
    p["g2"], p["b2"] = bn_p(mid_chan)
    p["w3"] = conv_w(1, mid_chan, out_chan)
    p["g3"], p["b3"] = bn_p(out_chan)
    if stride != 1 or in_chan != out_chan:
        p["wsc"] = conv_w(1, in_chan, out_chan)
        p["gsc"], p["bsc"] = bn_p(out_chan)
    return p


# ----------------------------------- main ------------------------------------

if __name__ == "__main__":
    root = jax.random.PRNGKey(0)
    B, L = 2, 64
    # (in_chan, out_chan, stride): covers 4x expansion, 2x ratio + stride 2, and the
    # identity-shortcut case (out == in).
    configs = [(64, 256, 1), (128, 256, 2), (64, 64, 1)]

    for idx, (cin, cout, stride) in enumerate(configs):
        kp, kx = jax.random.split(jax.random.fold_in(root, idx))
        params = init_bottleneck_params(kp, cin, cout, stride)
        x_ncl = jax.random.normal(kx, (B, cin, L), jnp.float32)   # PyTorch (N, C, L)
        x = jnp.transpose(x_ncl, (0, 2, 1))                       # kernel layout (N, L, C)

        fwd = jax.jit(functools.partial(bottleneck_forward_pallas, stride=stride))
        out = jax.block_until_ready(fwd(params, x))
        ref = bottleneck_forward_ref(params, x, stride=stride)
        np.testing.assert_allclose(np.asarray(out), np.asarray(ref),
                                   rtol=2e-3, atol=2e-3)

        if idx == 0:
            # bf16 MXU-operand variant (useful on v6e/v7x); BN math stays f32. Smoke test.
            out_bf16 = jax.block_until_ready(
                bottleneck_forward_pallas(params, x, stride=stride,
                                          compute_dtype=jnp.bfloat16))
            assert out_bf16.shape == out.shape
            assert bool(jnp.all(jnp.isfinite(out_bf16)))

    print("KERNEL_OK")
</pallas_src>

<mosaic_0001>
module attributes {stable_mosaic.version = 11 : i64} {
  func.func @_bottleneck_kernel(%arg0: memref<2x64x64xf32, #tpu.memory_space<vmem>>, %arg1: memref<64x64xf32, #tpu.memory_space<vmem>>, %arg2: memref<1x64xf32, #tpu.memory_space<vmem>>, %arg3: memref<1x64xf32, #tpu.memory_space<vmem>>, %arg4: memref<3x64x64xf32, #tpu.memory_space<vmem>>, %arg5: memref<1x64xf32, #tpu.memory_space<vmem>>, %arg6: memref<1x64xf32, #tpu.memory_space<vmem>>, %arg7: memref<64x256xf32, #tpu.memory_space<vmem>>, %arg8: memref<1x256xf32, #tpu.memory_space<vmem>>, %arg9: memref<1x256xf32, #tpu.memory_space<vmem>>, %arg10: memref<64x256xf32, #tpu.memory_space<vmem>>, %arg11: memref<1x256xf32, #tpu.memory_space<vmem>>, %arg12: memref<1x256xf32, #tpu.memory_space<vmem>>, %arg13: memref<2x64x256xf32, #tpu.memory_space<vmem>>, %arg14: memref<2x80x64xf32, #tpu.memory_space<vmem>>) attributes {dimension_semantics = [], scalar_prefetch = 0 : i64, scratch_operands = 1 : i64, tpu.core_type = #tpu.core_type<tc>} {
    %c0 = arith.constant 0 : index
    %c0_0 = arith.constant 0 : index
    %c0_1 = arith.constant 0 : index
    %0 = vector.load %arg0[%c0, %c0_0, %c0_1] : memref<2x64x64xf32, #tpu.memory_space<vmem>>, vector<2x64x64xf32>
    %1 = vector.shape_cast %0 : vector<2x64x64xf32> to vector<128x64xf32>
    %c0_2 = arith.constant 0 : index
    %c0_3 = arith.constant 0 : index
    %2 = vector.load %arg1[%c0_2, %c0_3] : memref<64x64xf32, #tpu.memory_space<vmem>>, vector<64x64xf32>
    %cst = arith.constant dense<0.000000e+00> : vector<128x64xf32>
    %3 = tpu.matmul %1, %2, %cst {dimension_numbers = #tpu.dot_dimension_numbers<[1], [0], [0], [1], [0, 0, 1, 1], [], []>} : vector<128x64xf32>, vector<64x64xf32>, vector<128x64xf32> -> vector<128x64xf32>
    %cst_4 = arith.constant dense<0.000000e+00> : vector<64xf32>
    %4 = vector.multi_reduction <add>, %3, %cst_4 [0] : vector<128x64xf32> to vector<64xf32>
    %5 = vector.shape_cast %4 : vector<64xf32> to vector<1x64xf32>
    %cst_5 = arith.constant 1.280000e+02 : f32
    %6 = vector.broadcast %cst_5 : f32 to vector<1x64xf32>
    %7 = arith.divf %5, %6 : vector<1x64xf32>
    %8 = vector.broadcast %7 : vector<1x64xf32> to vector<128x64xf32>
    %9 = arith.subf %3, %8 : vector<128x64xf32>
    %10 = arith.mulf %9, %9 : vector<128x64xf32>
    %cst_6 = arith.constant dense<0.000000e+00> : vector<64xf32>
    %11 = vector.multi_reduction <add>, %10, %cst_6 [0] : vector<128x64xf32> to vector<64xf32>
    %12 = vector.shape_cast %11 : vector<64xf32> to vector<1x64xf32>
    %cst_7 = arith.constant 1.280000e+02 : f32
    %13 = vector.broadcast %cst_7 : f32 to vector<1x64xf32>
    %14 = arith.divf %12, %13 : vector<1x64xf32>
    %15 = vector.broadcast %7 : vector<1x64xf32> to vector<128x64xf32>
    %16 = arith.subf %3, %15 : vector<128x64xf32>
    %cst_8 = arith.constant 9.99999974E-6 : f32
    %17 = vector.broadcast %cst_8 : f32 to vector<1x64xf32>
    %18 = arith.addf %14, %17 : vector<1x64xf32>
    %19 = math.rsqrt %18 : vector<1x64xf32>
    %20 = vector.broadcast %19 : vector<1x64xf32> to vector<128x64xf32>
    %21 = arith.mulf %16, %20 : vector<128x64xf32>
    %c0_9 = arith.constant 0 : index
    %c0_10 = arith.constant 0 : index
    %22 = vector.load %arg2[%c0_9, %c0_10] : memref<1x64xf32, #tpu.memory_space<vmem>>, vector<1x64xf32>
    %23 = vector.broadcast %22 : vector<1x64xf32> to vector<128x64xf32>
    %24 = arith.mulf %21, %23 : vector<128x64xf32>
    %c0_11 = arith.constant 0 : index
    %c0_12 = arith.constant 0 : index
    %25 = vector.load %arg3[%c0_11, %c0_12] : memref<1x64xf32, #tpu.memory_space<vmem>>, vector<1x64xf32>
    %26 = vector.broadcast %25 : vector<1x64xf32> to vector<128x64xf32>
    %27 = arith.addf %24, %26 : vector<128x64xf32>
    %cst_13 = arith.constant 0.000000e+00 : f32
    %28 = vector.broadcast %cst_13 : f32 to vector<128x64xf32>
    %29 = arith.maximumf %27, %28 : vector<128x64xf32>
    %cst_14 = arith.constant 0.000000e+00 : f32
    %30 = vector.broadcast %cst_14 : f32 to vector<2x80x64xf32>
    %c0_15 = arith.constant 0 : index
    %c0_16 = arith.constant 0 : index
    %c0_17 = arith.constant 0 : index
    %31 = vector.load %arg14[%c0_15, %c0_16, %c0_17] : memref<2x80x64xf32, #tpu.memory_space<vmem>>, vector<2x80x64xf32>
    tpu.vector_store %arg14[%c0_15, %c0_16, %c0_17], %30 {strides = array<i32>} : memref<2x80x64xf32, #tpu.memory_space<vmem>>, vector<2x80x64xf32>,
    %32 = vector.shape_cast %29 : vector<128x64xf32> to vector<2x64x64xf32>
    %c0_18 = arith.constant 0 : index
    %c8 = arith.constant 8 : index
    %c0_19 = arith.constant 0 : index
    %33 = vector.load %arg14[%c0_18, %c8, %c0_19] : memref<2x80x64xf32, #tpu.memory_space<vmem>>, vector<2x64x64xf32>
    tpu.vector_store %arg14[%c0_18, %c8, %c0_19], %32 {strides = array<i32>} : memref<2x80x64xf32, #tpu.memory_space<vmem>>, vector<2x64x64xf32>,
    %c0_20 = arith.constant 0 : index
    %c7 = arith.constant 7 : index
    %c0_21 = arith.constant 0 : index
    %34 = vector.load %arg14[%c0_20, %c7, %c0_21] : memref<2x80x64xf32, #tpu.memory_space<vmem>>, vector<2x64x64xf32>
    %35 = vector.shape_cast %34 : vector<2x64x64xf32> to vector<128x64xf32>
    %c0_22 = arith.constant 0 : index
    %c0_23 = arith.constant 0 : index
    %c0_24 = arith.constant 0 : index
    %36 = vector.load %arg4[%c0_22, %c0_23, %c0_24] : memref<3x64x64xf32, #tpu.memory_space<vmem>>, vector<1x64x64xf32>
    %37 = vector.shape_cast %36 : vector<1x64x64xf32> to vector<64x64xf32>
    %cst_25 = arith.constant dense<0.000000e+00> : vector<128x64xf32>
    %38 = tpu.matmul %35, %37, %cst_25 {dimension_numbers = #tpu.dot_dimension_numbers<[1], [0], [0], [1], [0, 0, 1, 1], [], []>} : vector<128x64xf32>, vector<64x64xf32>, vector<128x64xf32> -> vector<128x64xf32>
    %c0_26 = arith.constant 0 : index
    %c8_27 = arith.constant 8 : index
    %c0_28 = arith.constant 0 : index
    %39 = vector.load %arg14[%c0_26, %c8_27, %c0_28] : memref<2x80x64xf32, #tpu.memory_space<vmem>>, vector<2x64x64xf32>
    %40 = vector.shape_cast %39 : vector<2x64x64xf32> to vector<128x64xf32>
    %c1 = arith.constant 1 : index
    %c0_29 = arith.constant 0 : index
    %c0_30 = arith.constant 0 : index
    %41 = vector.load %arg4[%c1, %c0_29, %c0_30] : memref<3x64x64xf32, #tpu.memory_space<vmem>>, vector<1x64x64xf32>
    %42 = vector.shape_cast %41 : vector<1x64x64xf32> to vector<64x64xf32>
    %cst_31 = arith.constant dense<0.000000e+00> : vector<128x64xf32>
    %43 = tpu.matmul %40, %42, %cst_31 {dimension_numbers = #tpu.dot_dimension_numbers<[1], [0], [0], [1], [0, 0, 1, 1], [], []>} : vector<128x64xf32>, vector<64x64xf32>, vector<128x64xf32> -> vector<128x64xf32>
    %44 = arith.addf %38, %43 : vector<128x64xf32>
    %c0_32 = arith.constant 0 : index
    %c9 = arith.constant 9 : index
    %c0_33 = arith.constant 0 : index
    %45 = vector.load %arg14[%c0_32, %c9, %c0_33] : memref<2x80x64xf32, #tpu.memory_space<vmem>>, vector<2x64x64xf32>
    %46 = vector.shape_cast %45 : vector<2x64x64xf32> to vector<128x64xf32>
    %c2 = arith.constant 2 : index
    %c0_34 = arith.constant 0 : index
    %c0_35 = arith.constant 0 : index
    %47 = vector.load %arg4[%c2, %c0_34, %c0_35] : memref<3x64x64xf32, #tpu.memory_space<vmem>>, vector<1x64x64xf32>
    %48 = vector.shape_cast %47 : vector<1x64x64xf32> to vector<64x64xf32>
    %cst_36 = arith.constant dense<0.000000e+00> : vector<128x64xf32>
    %49 = tpu.matmul %46, %48, %cst_36 {dimension_numbers = #tpu.dot_dimension_numbers<[1], [0], [0], [1], [0, 0, 1, 1], [], []>} : vector<128x64xf32>, vector<64x64xf32>, vector<128x64xf32> -> vector<128x64xf32>
    %50 = arith.addf %44, %49 : vector<128x64xf32>
    %cst_37 = arith.constant dense<0.000000e+00> : vector<64xf32>
    %51 = vector.multi_reduction <add>, %50, %cst_37 [0] : vector<128x64xf32> to vector<64xf32>
    %52 = vector.shape_cast %51 : vector<64xf32> to vector<1x64xf32>
    %cst_38 = arith.constant 1.280000e+02 : f32
    %53 = vector.broadcast %cst_38 : f32 to vector<1x64xf32>
    %54 = arith.divf %52, %53 : vector<1x64xf32>
    %55 = vector.broadcast %54 : vector<1x64xf32> to vector<128x64xf32>
    %56 = arith.subf %50, %55 : vector<128x64xf32>
    %57 = arith.mulf %56, %56 : vector<128x64xf32>
    %cst_39 = arith.constant dense<0.000000e+00> : vector<64xf32>
    %58 = vector.multi_reduction <add>, %57, %cst_39 [0] : vector<128x64xf32> to vector<64xf32>
    %59 = vector.shape_cast %58 : vector<64xf32> to vector<1x64xf32>
    %cst_40 = arith.constant 1.280000e+02 : f32
    %60 = vector.broadcast %cst_40 : f32 to vector<1x64xf32>
    %61 = arith.divf %59, %60 : vector<1x64xf32>
    %62 = vector.broadcast %54 : vector<1x64xf32> to vector<128x64xf32>
    %63 = arith.subf %50, %62 : vector<128x64xf32>
    %cst_41 = arith.constant 9.99999974E-6 : f32
    %64 = vector.broadcast %cst_41 : f32 to vector<1x64xf32>
    %65 = arith.addf %61, %64 : vector<1x64xf32>
    %66 = math.rsqrt %65 : vector<1x64xf32>
    %67 = vector.broadcast %66 : vector<1x64xf32> to vector<128x64xf32>
    %68 = arith.mulf %63, %67 : vector<128x64xf32>
    %c0_42 = arith.constant 0 : index
    %c0_43 = arith.constant 0 : index
    %69 = vector.load %arg5[%c0_42, %c0_43] : memref<1x64xf32, #tpu.memory_space<vmem>>, vector<1x64xf32>
    %70 = vector.broadcast %69 : vector<1x64xf32> to vector<128x64xf32>
    %71 = arith.mulf %68, %70 : vector<128x64xf32>
    %c0_44 = arith.constant 0 : index
    %c0_45 = arith.constant 0 : index
    %72 = vector.load %arg6[%c0_44, %c0_45] : memref<1x64xf32, #tpu.memory_space<vmem>>, vector<1x64xf32>
    %73 = vector.broadcast %72 : vector<1x64xf32> to vector<128x64xf32>
    %74 = arith.addf %71, %73 : vector<128x64xf32>
    %cst_46 = arith.constant 0.000000e+00 : f32
    %75 = vector.broadcast %cst_46 : f32 to vector<128x64xf32>
    %76 = arith.maximumf %74, %75 : vector<128x64xf32>
    %c0_47 = arith.constant 0 : index
    %c0_48 = arith.constant 0 : index
    %77 = vector.load %arg7[%c0_47, %c0_48] : memref<64x256xf32, #tpu.memory_space<vmem>>, vector<64x256xf32>
    %cst_49 = arith.constant dense<0.000000e+00> : vector<128x256xf32>
    %78 = tpu.matmul %76, %77, %cst_49 {dimension_numbers = #tpu.dot_dimension_numbers<[1], [0], [0], [1], [0, 0, 1, 1], [], []>} : vector<128x64xf32>, vector<64x256xf32>, vector<128x256xf32> -> vector<128x256xf32>
    %cst_50 = arith.constant dense<0.000000e+00> : vector<256xf32>
    %79 = vector.multi_reduction <add>, %78, %cst_50 [0] : vector<128x256xf32> to vector<256xf32>
    %80 = vector.shape_cast %79 : vector<256xf32> to vector<1x256xf32>
    %cst_51 = arith.constant 1.280000e+02 : f32
    %81 = vector.broadcast %cst_51 : f32 to vector<1x256xf32>
    %82 = arith.divf %80, %81 : vector<1x256xf32>
    %83 = vector.broadcast %82 : vector<1x256xf32> to vector<128x256xf32>
    %84 = arith.subf %78, %83 : vector<128x256xf32>
    %85 = arith.mulf %84, %84 : vector<128x256xf32>
    %cst_52 = arith.constant dense<0.000000e+00> : vector<256xf32>
    %86 = vector.multi_reduction <add>, %85, %cst_52 [0] : vector<128x256xf32> to vector<256xf32>
    %87 = vector.shape_cast %86 : vector<256xf32> to vector<1x256xf32>
    %cst_53 = arith.constant 1.280000e+02 : f32
    %88 = vector.broadcast %cst_53 : f32 to vector<1x256xf32>
    %89 = arith.divf %87, %88 : vector<1x256xf32>
    %90 = vector.broadcast %82 : vector<1x256xf32> to vector<128x256xf32>
    %91 = arith.subf %78, %90 : vector<128x256xf32>
    %cst_54 = arith.constant 9.99999974E-6 : f32
    %92 = vector.broadcast %cst_54 : f32 to vector<1x256xf32>
    %93 = arith.addf %89, %92 : vector<1x256xf32>
    %94 = math.rsqrt %93 : vector<1x256xf32>
    %95 = vector.broadcast %94 : vector<1x256xf32> to vector<128x256xf32>
    %96 = arith.mulf %91, %95 : vector<128x256xf32>
    %c0_55 = arith.constant 0 : index
    %c0_56 = arith.constant 0 : index
    %97 = vector.load %arg8[%c0_55, %c0_56] : memref<1x256xf32, #tpu.memory_space<vmem>>, vector<1x256xf32>
    %98 = vector.broadcast %97 : vector<1x256xf32> to vector<128x256xf32>
    %99 = arith.mulf %96, %98 : vector<128x256xf32>
    %c0_57 = arith.constant 0 : index
    %c0_58 = arith.constant 0 : index
    %100 = vector.load %arg9[%c0_57, %c0_58] : memref<1x256xf32, #tpu.memory_space<vmem>>, vector<1x256xf32>
    %101 = vector.broadcast %100 : vector<1x256xf32> to vector<128x256xf32>
    %102 = arith.addf %99, %101 : vector<128x256xf32>
    %c0_59 = arith.constant 0 : index
    %c0_60 = arith.constant 0 : index
    %103 = vector.load %arg10[%c0_59, %c0_60] : memref<64x256xf32, #tpu.memory_space<vmem>>, vector<64x256xf32>
    %cst_61 = arith.constant dense<0.000000e+00> : vector<128x256xf32>
    %104 = tpu.matmul %1, %103, %cst_61 {dimension_numbers = #tpu.dot_dimension_numbers<[1], [0], [0], [1], [0, 0, 1, 1], [], []>} : vector<128x64xf32>, vector<64x256xf32>, vector<128x256xf32> -> vector<128x256xf32>
    %cst_62 = arith.constant dense<0.000000e+00> : vector<256xf32>
    %105 = vector.multi_reduction <add>, %104, %cst_62 [0] : vector<128x256xf32> to vector<256xf32>
    %106 = vector.shape_cast %105 : vector<256xf32> to vector<1x256xf32>
    %cst_63 = arith.constant 1.280000e+02 : f32
    %107 = vector.broadcast %cst_63 : f32 to vector<1x256xf32>
    %108 = arith.divf %106, %107 : vector<1x256xf32>
    %109 = vector.broadcast %108 : vector<1x256xf32> to vector<128x256xf32>
    %110 = arith.subf %104, %109 : vector<128x256xf32>
    %111 = arith.mulf %110, %110 : vector<128x256xf32>
    %cst_64 = arith.constant dense<0.000000e+00> : vector<256xf32>
    %112 = vector.multi_reduction <add>, %111, %cst_64 [0] : vector<128x256xf32> to vector<256xf32>
    %113 = vector.shape_cast %112 : vector<256xf32> to vector<1x256xf32>
    %cst_65 = arith.constant 1.280000e+02 : f32
    %114 = vector.broadcast %cst_65 : f32 to vector<1x256xf32>
    %115 = arith.divf %113, %114 : vector<1x256xf32>
    %116 = vector.broadcast %108 : vector<1x256xf32> to vector<128x256xf32>
    %117 = arith.subf %104, %116 : vector<128x256xf32>
    %cst_66 = arith.constant 9.99999974E-6 : f32
    %118 = vector.broadcast %cst_66 : f32 to vector<1x256xf32>
    %119 = arith.addf %115, %118 : vector<1x256xf32>
    %120 = math.rsqrt %119 : vector<1x256xf32>
    %121 = vector.broadcast %120 : vector<1x256xf32> to vector<128x256xf32>
    %122 = arith.mulf %117, %121 : vector<128x256xf32>
    %c0_67 = arith.constant 0 : index
    %c0_68 = arith.constant 0 : index
    %123 = vector.load %arg11[%c0_67, %c0_68] : memref<1x256xf32, #tpu.memory_space<vmem>>, vector<1x256xf32>
    %124 = vector.broadcast %123 : vector<1x256xf32> to vector<128x256xf32>
    %125 = arith.mulf %122, %124 : vector<128x256xf32>
    %c0_69 = arith.constant 0 : index
    %c0_70 = arith.constant 0 : index
    %126 = vector.load %arg12[%c0_69, %c0_70] : memref<1x256xf32, #tpu.memory_space<vmem>>, vector<1x256xf32>
    %127 = vector.broadcast %126 : vector<1x256xf32> to vector<128x256xf32>
    %128 = arith.addf %125, %127 : vector<128x256xf32>
    %129 = arith.addf %102, %128 : vector<128x256xf32>
    %cst_71 = arith.constant 0.000000e+00 : f32
    %130 = vector.broadcast %cst_71 : f32 to vector<128x256xf32>
    %131 = arith.maximumf %129, %130 : vector<128x256xf32>
    %132 = vector.shape_cast %131 : vector<128x256xf32> to vector<2x64x256xf32>
    %c0_72 = arith.constant 0 : index
    %c0_73 = arith.constant 0 : index
    %c0_74 = arith.constant 0 : index
    %133 = vector.load %arg13[%c0_72, %c0_73, %c0_74] : memref<2x64x256xf32, #tpu.memory_space<vmem>>, vector<2x64x256xf32>
    tpu.vector_store %arg13[%c0_72, %c0_73, %c0_74], %132 {strides = array<i32>} : memref<2x64x256xf32, #tpu.memory_space<vmem>>, vector<2x64x256xf32>,
    return
  }
}

</mosaic_0001>

<bundles_post_ra>
// kernel: bottleneck_forward_pallas.1
= control target key start
LH: loop header
LB: loop body
LE: loop exit
PB: predicated region body
PF: predicated region fallthrough
CT: control target
= control target key end

     0   :  { %18 = vsyncpa [#allocation4], 0  ;;  %s4838_s0 = inlined_call_operand.hbm [shape: f32[2,64,64], index: 0, kind: input, shape index: {}]   ;;  %s4839_s1 = inlined_call_operand.vmem [shape: f32[64,64], index: 1, kind: input, shape index: {}]   ;;  %s4840_s2 = inlined_call_operand.vmem [shape: f32[1,64], index: 2, kind: input, shape index: {}]   ;;  %s4841_s3 = inlined_call_operand.hbm [shape: f32[1,64], index: 3, kind: input, shape index: {}]   ;;  %s4842_s4 = inlined_call_operand.hbm [shape: f32[3,64,64], index: 4, kind: input, shape index: {}]   ;;  %s4843_s5 = inlined_call_operand.hbm [shape: f32[1,64], index: 5, kind: input, shape index: {}]   ;;  %s4844_s6 = inlined_call_operand.hbm [shape: f32[1,64], index: 6, kind: input, shape index: {}]   ;;  %s4845_s7 = inlined_call_operand.hbm [shape: f32[64,256], index: 7, kind: input, shape index: {}]   ;;  %s4846_s8 = inlined_call_operand.vmem [shape: f32[1,256], index: 8, kind: input, shape index: {}]   ;;  %s4847_s9 = inlined_call_operand.vmem [shape: f32[1,256], index: 9, kind: input, shape index: {}]   ;;  %s4848_s10 = inlined_call_operand.hbm [shape: f32[64,256], index: 10, kind: input, shape index: {}]   ;;  %s4849_s11 = inlined_call_operand.vmem [shape: f32[1,256], index: 11, kind: input, shape index: {}]   ;;  %s4850_s12 = inlined_call_operand.hbm [shape: f32[1,256], index: 12, kind: input, shape index: {}]   ;;  %s4851_s13 = inlined_call_operand.hbm [shape: f32[2,64,256], index: 13, kind: output, shape index: {}]  }
   0x1   :  { %19 = vsyncpa [#allocation7], 0 }
   0x2   :  { %20 = vsyncpa [#allocation10], 0 }
   0x3   :  { %21 = vsyncpa [#allocation13], 0 }
   0x4   :  { %22 = vsyncpa [#allocation16], 0 }
   0x5   :  { %23 = vsyncpa [#allocation5], 0  ;;  %s3253_s25 = smov [#allocation6]   ;;  %s3254_s27 = smov [#allocation9]  }
   0x6   :  { %s46_s26 = sshll.u32 %s3253_s25, 4  ;;  %s68_s28 = sshll.u32 %s3254_s27, 4  ;;  %s47_s26 = int_to_ptr.vmem [resolvable:$true] %s46_s26  ;;  %s69_s28 = int_to_ptr.vmem [resolvable:$true] %s68_s28 }
   0x7   :  { %s3043_s14 = scalar_lea.hbm %s4841_s3, 16 }
   0x8   :  { %p3044_p0 = scmp.ne.s32.totalorder %s4841_s3, %s3043_s14  ;;  %p3047_p1 = scmp.lt.u32.totalorder %s3043_s14, %s4841_s3 }
   0xa   :  { %p3049_p2 = pnand %p3047_p1, %p3044_p0 }
   0xc   :  { %3052 = shalt.err (!%p3049_p2)
}
   0xd   :  { %s3053_s19 = scalar_lea.vmem %s47_s26, 16  ;;  %s3057_s20 = scalar_lea.vmem %s47_s26, 32 }
   0xe   :  { %p3054_p3 = scmp.ne.s32.totalorder %s47_s26, %s3053_s19  ;;  %p3058_p4 = scmp.lt.s32.totalorder %s47_s26, %s47_s26 }
   0xf   :  { %p3059_p5 = scmp.lt.s32.totalorder %s3057_s20, %s3053_s19 }
  0x11   :  { %p3060_p6 = por %p3059_p5, %p3058_p4 }
  0x13   :  { %p3061_p7 = pnand %p3060_p6, %p3054_p3 }
  0x15   :  { %3064 = shalt.err (!%p3061_p7)
}
  0x16   :  { %49 = dma.hbm_to_vmem [thread:$0]  %s4841_s3, 16, %s47_s26, [#allocation7]  }
  0x17   :  { %s3065_s25 = scalar_lea.hbm %s4843_s5, 16 }
  0x18   :  { %p3066_p8 = scmp.ne.s32.totalorder %s4843_s5, %s3065_s25  ;;  %p3069_p9 = scmp.lt.u32.totalorder %s3065_s25, %s4843_s5 }
  0x1a   :  { %p3071_p10 = pnand %p3069_p9, %p3066_p8 }
  0x1c   :  { %3074 = shalt.err (!%p3071_p10)
}
  0x1d   :  { %s3075_s15 = scalar_lea.vmem %s69_s28, 16  ;;  %s3079_s16 = scalar_lea.vmem %s69_s28, 32 }
  0x1e   :  { %p3076_p11 = scmp.ne.s32.totalorder %s69_s28, %s3075_s15  ;;  %p3080_p12 = scmp.lt.s32.totalorder %s69_s28, %s69_s28 }
  0x1f   :  { %p3081_p13 = scmp.lt.s32.totalorder %s3079_s16, %s3075_s15 }
  0x21   :  { %p3082_p0 = por %p3081_p13, %p3080_p12 }
  0x23   :  { %p3083_p1 = pnand %p3082_p0, %p3076_p11 }
  0x25   :  { %3086 = shalt.err (!%p3083_p1)
}
  0x26   :  { %71 = dma.hbm_to_vmem [thread:$0]  %s4843_s5, 16, %s69_s28, [#allocation10]  }
  0x27   :  { %s3255_s17 = smov [#allocation12]   ;;  %s3087_s21 = scalar_lea.hbm %s4845_s7, 2048 }
  0x28   :  { %s87_s18 = sshll.u32 %s3255_s17, 4  ;;  %p3088_p2 = scmp.ne.s32.totalorder %s4845_s7, %s3087_s21  ;;  %s88_s18 = int_to_ptr.vmem [resolvable:$true] %s87_s18 }
  0x29   :  { %p3091_p3 = scmp.lt.u32.totalorder %s3087_s21, %s4845_s7 }
  0x2b   :  { %p3093_p4 = pnand %p3091_p3, %p3088_p2 }
  0x2d   :  { %3096 = shalt.err (!%p3093_p4)
}
  0x2e   :  { %s3097_s27 = scalar_lea.vmem %s88_s18, 2048  ;;  %p3102_p6 = scmp.lt.s32.totalorder %s88_s18, %s88_s18 }
  0x2f   :  { %p3098_p5 = scmp.ne.s32.totalorder %s88_s18, %s3097_s27  ;;  %p3103_p7 = scmp.lt.s32.totalorder %s3097_s27, %s3097_s27 }
  0x31   :  { %p3104_p8 = por %p3103_p7, %p3102_p6 }
  0x33   :  { %p3105_p9 = pnand %p3104_p8, %p3098_p5 }
  0x35   :  { %3108 = shalt.err (!%p3105_p9)
}
  0x36   :  { %s3256_s5 = smov 256   ;;  %s3257_s28 = smov 16  }
  0x37   :  { %93 = dma.hbm_to_vmem [thread:$0]  %s4845_s7, 2048, %s88_s18, [#allocation13], %s3256_s5, %s3256_s5, %s3257_s28  }
  0x38   :  { %s3258_s14 = smov [#allocation3]   ;;  %s3109_s26 = scalar_lea.hbm %s4838_s0, 2048 }
  0x39   :  { %s29_s15 = sshll.u32 %s3258_s14, 4  ;;  %p3110_p10 = scmp.ne.s32.totalorder %s4838_s0, %s3109_s26  ;;  %s30_s15 = int_to_ptr.vmem [resolvable:$true] %s29_s15 }
  0x3a   :  { %p3113_p11 = scmp.lt.u32.totalorder %s3109_s26, %s4838_s0 }
  0x3c   :  { %p3115_p12 = pnand %p3113_p11, %p3110_p10 }
  0x3e   :  { %3118 = shalt.err (!%p3115_p12)
}
  0x3f   :  { %s3119_s22 = scalar_lea.vmem %s30_s15, 2048  ;;  %p3124_p0 = scmp.lt.s32.totalorder %s30_s15, %s30_s15 }
  0x40   :  { %p3120_p13 = scmp.ne.s32.totalorder %s30_s15, %s3119_s22  ;;  %p3125_p1 = scmp.lt.s32.totalorder %s3119_s22, %s3119_s22 }
  0x42   :  { %p3126_p2 = por %p3125_p1, %p3124_p0 }
  0x44   :  { %p3127_p3 = pnand %p3126_p2, %p3120_p13 }
  0x46   :  { %3130 = shalt.err (!%p3127_p3)
}
  0x47   :  { %s3259_s7 = smov 128   ;;  %s3260_s18 = smov 8  }
  0x48   :  { %35 = dma.hbm_to_vmem [thread:$0]  %s4838_s0, 2048, %s30_s15, [#allocation4], %s3259_s7, %s3259_s7, %s3260_s18  }
  0x49   :  { %s3261_s25 = smov [#allocation8]   ;;  %s3262_s29 = smov [#allocation11]  }
  0x4a   :  { %s55_s27 = sshll.u32 %s3261_s25, 4  ;;  %s78_s30 = sshll.u32 %s3262_s29, 4  ;;  %s56_s27 = int_to_ptr.vmem [resolvable:$true] %s55_s27  ;;  %s79_s30 = int_to_ptr.vmem [resolvable:$true] %s78_s30 }
  0x4b   :  { %s3131_s3 = scalar_lea.hbm %s4842_s4, 3072 }
  0x4c   :  { %p3132_p4 = scmp.ne.s32.totalorder %s4842_s4, %s3131_s3  ;;  %p3135_p5 = scmp.lt.u32.totalorder %s3131_s3, %s4842_s4 }
  0x4e   :  { %p3137_p6 = pnand %p3135_p5, %p3132_p4 }
  0x50   :  { %3140 = shalt.err (!%p3137_p6)
}
  0x51   :  { %s3141_s0 = scalar_lea.vmem %s56_s27, 3072  ;;  %p3146_p8 = scmp.lt.s32.totalorder %s56_s27, %s56_s27 }
  0x52   :  { %p3142_p7 = scmp.ne.s32.totalorder %s56_s27, %s3141_s0  ;;  %p3147_p9 = scmp.lt.s32.totalorder %s3141_s0, %s3141_s0 }
  0x54   :  { %p3148_p10 = por %p3147_p9, %p3146_p8 }
  0x56   :  { %p3149_p11 = pnand %p3148_p10, %p3142_p7 }
  0x58   :  { %3152 = shalt.err (!%p3149_p11)
}
  0x59   :  { %61 = dma.hbm_to_vmem [thread:$0]  %s4842_s4, 3072, %s56_s27, [#allocation7], %s3259_s7, %s3259_s7, %s3260_s18  }
  0x5a   :  { %s3153_s24 = scalar_lea.hbm %s4844_s6, 16 }
  0x5b   :  { %p3154_p12 = scmp.ne.s32.totalorder %s4844_s6, %s3153_s24  ;;  %p3157_p13 = scmp.lt.u32.totalorder %s3153_s24, %s4844_s6 }
  0x5d   :  { %p3159_p0 = pnand %p3157_p13, %p3154_p12 }
  0x5f   :  { %3162 = shalt.err (!%p3159_p0)
}
  0x60   :  { %s3163_s3 = scalar_lea.vmem %s79_s30, 16  ;;  %s3167_s26 = scalar_lea.vmem %s79_s30, 32 }
  0x61   :  { %p3164_p1 = scmp.ne.s32.totalorder %s79_s30, %s3163_s3  ;;  %p3168_p2 = scmp.lt.s32.totalorder %s79_s30, %s79_s30 }
  0x62   :  { %p3169_p3 = scmp.lt.s32.totalorder %s3167_s26, %s3163_s3 }
  0x64   :  { %p3170_p4 = por %p3169_p3, %p3168_p2 }
  0x66   :  { %p3171_p5 = pnand %p3170_p4, %p3164_p1 }
  0x68   :  { %3174 = shalt.err (!%p3171_p5)
}
  0x69   :  { %81 = dma.hbm_to_vmem [thread:$0]  %s4844_s6, 16, %s79_s30, [#allocation10]  }
  0x6a   :  { %s3263_s18 = smov [#allocation14]   ;;  %s3264_s17 = smov [#allocation15]  }
  0x6b   :  { %s103_s27 = sshll.u32 %s3263_s18, 4  ;;  %s118_s19 = sshll.u32 %s3264_s17, 4  ;;  %s104_s27 = int_to_ptr.vmem [resolvable:$true] %s103_s27  ;;  %s119_s19 = int_to_ptr.vmem [resolvable:$true] %s118_s19 }
  0x6c   :  { %s3175_s15 = scalar_lea.hbm %s4848_s10, 2048 }
  0x6d   :  { %p3176_p6 = scmp.ne.s32.totalorder %s4848_s10, %s3175_s15  ;;  %p3179_p7 = scmp.lt.u32.totalorder %s3175_s15, %s4848_s10 }
  0x6f   :  { %p3181_p8 = pnand %p3179_p7, %p3176_p6 }
  0x71   :  { %3184 = shalt.err (!%p3181_p8)
}
  0x72   :  { %s3185_s6 = scalar_lea.vmem %s104_s27, 2048  ;;  %p3190_p10 = scmp.lt.s32.totalorder %s104_s27, %s104_s27 }
  0x73   :  { %p3186_p9 = scmp.ne.s32.totalorder %s104_s27, %s3185_s6  ;;  %p3191_p11 = scmp.lt.s32.totalorder %s3185_s6, %s3185_s6 }
  0x75   :  { %p3192_p12 = por %p3191_p11, %p3190_p10 }
  0x77   :  { %p3193_p13 = pnand %p3192_p12, %p3186_p9 }
  0x79   :  { %3196 = shalt.err (!%p3193_p13)
}
  0x7a   :  { %109 = dma.hbm_to_vmem [thread:$0]  %s4848_s10, 2048, %s104_s27, [#allocation13], %s3256_s5, %s3256_s5, %s3257_s28  }
  0x7b   :  { %s3197_s16 = scalar_lea.hbm %s4850_s12, 32 }
  0x7c   :  { %p3198_p0 = scmp.ne.s32.totalorder %s4850_s12, %s3197_s16  ;;  %p3201_p1 = scmp.lt.u32.totalorder %s3197_s16, %s4850_s12 }
  0x7e   :  { %p3203_p2 = pnand %p3201_p1, %p3198_p0 }
  0x80   :  { %3206 = shalt.err (!%p3203_p2)
}
  0x81   :  { %s3207_s18 = scalar_lea.vmem %s119_s19, 32  ;;  %p3212_p4 = scmp.lt.s32.totalorder %s119_s19, %s119_s19 }
  0x82   :  { %p3208_p3 = scmp.ne.s32.totalorder %s119_s19, %s3207_s18  ;;  %p3213_p5 = scmp.lt.s32.totalorder %s3207_s18, %s3207_s18 }
  0x84   :  { %p3214_p6 = por %p3213_p5, %p3212_p4 }
  0x86   :  { %p3215_p7 = pnand %p3214_p6, %p3208_p3 }
  0x88   :  { %3218 = shalt.err (!%p3215_p7)
}
  0x89   :  { %121 = dma.hbm_to_vmem [thread:$0]  %s4850_s12, 32, %s119_s19, [#allocation16]  }
  0x8a   :  { %3241 = dma.done.wait [#allocation4], 2048  }
  0x8b   :  { %3242 = vsyncadd [#allocation4], 4294965248 }
  0x8c   :  { %3243 = dma.done.wait [#allocation7], 3088  }
  0x8d   :  { %3244 = vsyncadd [#allocation7], 4294964208 }
  0x8e   :  { %3245 = dma.done.wait [#allocation10], 32  }
  0x8f   :  { %3246 = vsyncadd [#allocation10], 4294967264 }
  0x90   :  { %3247 = dma.done.wait [#allocation13], 4096  }
  0x91   :  { %3248 = vsyncadd [#allocation13], 4294963200 }
  0x92   :  { %3249 = dma.done.wait [#allocation16], 32  }
  0x93   :  { %3250 = vsyncadd [#allocation16], 4294967264  ;;  %v162_v0 = vld [vmem:[%s4839_s1] sm:$0xff]  ;;  %v163_v1 = vld [vmem:[%s4839_s1 + $0x8] sm:$0xff]  ;;  %vm170_vm0 = vcmask 523264   ;;  %v3265_v41 = vmov 0.0  }
  0x94   :  { %v164_v2 = vld [vmem:[%s4839_s1 + $0x10] sm:$0xff]  ;;  %v2873_v3 = vpack.c.bf16 %v163_v1, %v162_v0  ;;  %v165_v4 = vld [vmem:[%s4839_s1 + $0x18] sm:$0xff]  ;;  %v166_v6 = vld [vmem:[%s4839_s1 + $0x20] sm:$0xff]  ;;  %566 = vst.msk [vmem:[#allocation2 + $0x68] sm:$0xff] %vm170_vm0, %v3265_v41  ;;  %1574 = vmatprep.mubr.f32.mxu0 %v3265_v41 }
  0x95   :  { %v2877_v5 = vpack.c.bf16 %v165_v4, %v164_v2  ;;  %v167_v7 = vld [vmem:[%s4839_s1 + $0x28] sm:$0xff]  ;;  %v146_v8 = vld [vmem:[#allocation3] sm:$0xff]  ;;  %v168_v10 = vld [vmem:[%s4839_s1 + $0x30] sm:$0xff]  ;;  %567 = vst.msk [vmem:[#allocation2 + $0x70] sm:$0xff] %vm170_vm0, %v3265_v41 }
  0x96   :  { %2874 = vmatprep.subr.bf16.mxu1 %v2873_v3  ;;  %2729 = vmatprep.mubr.msk.f32.mxu1 %vm170_vm0, %v146_v8  ;;  %v2881_v9 = vpack.c.bf16 %v167_v7, %v166_v6  ;;  %v169_v11 = vld [vmem:[%s4839_s1 + $0x38] sm:$0xff]  ;;  %v147_v13 = vld [vmem:[#allocation3 + $0x8] sm:$0xff]  ;;  %v148_v14 = vld [vmem:[#allocation3 + $0x10] sm:$0xff]  ;;  %568 = vst.msk [vmem:[#allocation2 + $0x78] sm:$0xff] %vm170_vm0, %v3265_v41 }
  0x97   :  { %2876 = vmatpush3.bf16.msra.mxu1 %v2873_v3  ;;  %v2885_v12 = vpack.c.bf16 %v169_v11, %v168_v10  ;;  %v149_v15 = vld [vmem:[#allocation3 + $0x18] sm:$0xff]  ;;  %v150_v16 = vld [vmem:[#allocation3 + $0x20] sm:$0xff]  ;;  %v151_v17 = vld [vmem:[#allocation3 + $0x28] sm:$0xff]  ;;  %569 = vst.msk [vmem:[#allocation2 + $0x80] sm:$0xff] %vm170_vm0, %v3265_v41 }
  0x98   :  { %2878 = vmatprep.subr.bf16.mxu1 %v2877_v5  ;;  %v152_v18 = vld [vmem:[#allocation3 + $0x30] sm:$0xff]  ;;  %v153_v19 = vld [vmem:[#allocation3 + $0x38] sm:$0xff]  ;;  %v154_v20 = vld [vmem:[#allocation3 + $0x40] sm:$0xff]  ;;  %570 = vst.msk [vmem:[#allocation2 + $0x88] sm:$0xff] %vm170_vm0, %v3265_v41 }
  0x99   :  { %v155_v21 = vld [vmem:[#allocation3 + $0x48] sm:$0xff]  ;;  %v156_v22 = vld [vmem:[#allocation3 + $0x50] sm:$0xff]  ;;  %v157_v23 = vld [vmem:[#allocation3 + $0x58] sm:$0xff]  ;;  %571 = vst.msk [vmem:[#allocation2 + $0x90] sm:$0xff] %vm170_vm0, %v3265_v41 }
  0x9a   :  { %v158_v24 = vld [vmem:[#allocation3 + $0x60] sm:$0xff]  ;;  %v159_v25 = vld [vmem:[#allocation3 + $0x68] sm:$0xff]  ;;  %v160_v26 = vld [vmem:[#allocation3 + $0x70] sm:$0xff]  ;;  %553 = vst.msk [vmem:[#allocation2] sm:$0xff] %vm170_vm0, %v3265_v41 }
  0x9b   :  { %2880 = vmatpush3.bf16.msra.mxu1 %v2877_v5  ;;  %v161_v27 = vld [vmem:[#allocation3 + $0x78] sm:$0xff]  ;;  %v630_v28 = vld [vmem:[#allocation8 + $0x40] sm:$0xff]  ;;  %v631_v29 = vld [vmem:[#allocation8 + $0x48] sm:$0xff]  ;;  %554 = vst.msk [vmem:[#allocation2 + $0x8] sm:$0xff] %vm170_vm0, %v3265_v41 }
  0x9c   :  { %2882 = vmatprep.subr.bf16.mxu1 %v2881_v9  ;;  %v2889_v30 = vpack.c.bf16 %v631_v29, %v630_v28  ;;  %v632_v31 = vld [vmem:[#allocation8 + $0x50] sm:$0xff]  ;;  %v633_v32 = vld [vmem:[#allocation8 + $0x58] sm:$0xff]  ;;  %v634_v38 = vld [vmem:[#allocation8 + $0x60] sm:$0xff]  ;;  %555 = vst.msk [vmem:[#allocation2 + $0x10] sm:$0xff] %vm170_vm0, %v3265_v41 }
  0x9d   :  { %v2893_v33 = vpack.c.bf16 %v633_v32, %v632_v31  ;;  %v635_v39 = vld [vmem:[#allocation8 + $0x68] sm:$0xff]  ;;  %556 = vst.msk [vmem:[#allocation2 + $0x18] sm:$0xff] %vm170_vm0, %v3265_v41  ;;  %557 = vst.msk [vmem:[#allocation2 + $0x20] sm:$0xff] %vm170_vm0, %v3265_v41  ;;  %v636_v44 = vld [vmem:[#allocation8 + $0x70] sm:$0xff] }
  0x9e   :  { %558 = vst.msk [vmem:[#allocation2 + $0x28] sm:$0xff] %vm170_vm0, %v3265_v41  ;;  %559 = vst.msk [vmem:[#allocation2 + $0x30] sm:$0xff] %vm170_vm0, %v3265_v41  ;;  %v2897_v42 = vpack.c.bf16 %v635_v39, %v634_v38  ;;  %v637_v45 = vld [vmem:[#allocation8 + $0x78] sm:$0xff]  ;;  %v605_v58 = vld [vmem:[#allocation8] sm:$0xff] }
  0x9f   :  { %2884 = vmatpush3.bf16.msra.mxu1 %v2881_v9  ;;  %560 = vst.msk [vmem:[#allocation2 + $0x38] sm:$0xff] %vm170_vm0, %v3265_v41  ;;  %561 = vst.msk [vmem:[#allocation2 + $0x40] sm:$0xff] %vm170_vm0, %v3265_v41  ;;  %v2901_v47 = vpack.c.bf16 %v637_v45, %v636_v44  ;;  %v606_v59 = vld [vmem:[#allocation8 + $0x8] sm:$0xff] }
  0xa0   :  { %2886 = vmatprep.subr.bf16.mxu1 %v2885_v12  ;;  %562 = vst.msk [vmem:[#allocation2 + $0x48] sm:$0xff] %vm170_vm0, %v3265_v41  ;;  %563 = vst.msk [vmem:[#allocation2 + $0x50] sm:$0xff] %vm170_vm0, %v3265_v41  ;;  %v3535_v62 = vpack.c.bf16 %v606_v59, %v605_v58 }
  0xa1   :  { %564 = vst.msk [vmem:[#allocation2 + $0x58] sm:$0xff] %vm170_vm0, %v3265_v41  ;;  %565 = vst.msk [vmem:[#allocation2 + $0x60] sm:$0xff] %vm170_vm0, %v3265_v41 }
  0xa2   :  { %572 = vst.msk [vmem:[#allocation2 + $0x98] sm:$0xff] %vm170_vm0, %v3265_v41 }
  0xa3   :  { %2888 = vmatpush3.bf16.msra.mxu1 %v2885_v12 }
  0xa4   :  { %2890 = vmatprep.subr.bf16.mxu1 %v2889_v30 }
  0xa6   :  { %2730 = vmatmul.mubr.msk.f32.vlgmr.msra.gmra.mrb[0].mxu1 %vm170_vm0, %v147_v13 }
  0xa7   :  { %2732 = vmatprep.mubr.msk.f32.mxu1 %vm170_vm0, %v148_v14  ;;  %2892 = vmatpush3.bf16.msra.mxu1 %v2889_v30 }
  0xa8   :  { %2894 = vmatprep.subr.bf16.mxu1 %v2893_v33 }
  0xaa   :  { %2733 = vmatmul.mubr.msk.f32.gmra.mrb[2].mxu1 %vm170_vm0, %v149_v15 }
  0xab   :  { %2735 = vmatprep.mubr.msk.f32.mxu1 %vm170_vm0, %v150_v16  ;;  %2896 = vmatpush3.bf16.msra.mxu1 %v2893_v33 }
  0xac   :  { %2898 = vmatprep.subr.bf16.mxu1 %v2897_v42 }
  0xae   :  { %2736 = vmatmul.mubr.msk.f32.gmra.mrb[4].mxu1 %vm170_vm0, %v151_v17 }
  0xaf   :  { %2738 = vmatprep.mubr.msk.f32.mxu1 %vm170_vm0, %v152_v18  ;;  %2900 = vmatpush3.bf16.msra.mxu1 %v2897_v42 }
  0xb0   :  { %2902 = vmatprep.subr.bf16.mxu1 %v2901_v47 }
  0xb2   :  { %2739 = vmatmul.mubr.msk.f32.gmra.mrb[6].mxu1 %vm170_vm0, %v153_v19 }
  0xb3   :  { %2741 = vmatprep.mubr.msk.f32.mxu1 %vm170_vm0, %v154_v20  ;;  %2904 = vmatpush3.bf16.msra.mxu1 %v2901_v47 }
  0xb4   :  { %2906 = vmatprep.subr.bf16.mxu1 %v3535_v62 }
  0xb6   :  { %2742 = vmatmul.mubr.msk.f32.gmra.mrb[8].mxu1 %vm170_vm0, %v155_v21 }
  0xb7   :  { %2744 = vmatprep.mubr.msk.f32.mxu1 %vm170_vm0, %v156_v22 }
  0xba   :  { %2745 = vmatmul.mubr.msk.f32.gmra.mrb[10].mxu1 %vm170_vm0, %v157_v23 }
  0xbb   :  { %2747 = vmatprep.mubr.msk.f32.mxu1 %vm170_vm0, %v158_v24 }
  0xbe   :  { %2748 = vmatmul.mubr.msk.f32.gmra.mrb[12].mxu1 %vm170_vm0, %v159_v25 }
  0xbf   :  { %2750 = vmatprep.mubr.msk.f32.mxu1 %vm170_vm0, %v160_v26 }
  0xc2   :  { %2751 = vmatmul.mubr.msk.f32.gmra.mrb[14].mxu1 %vm170_vm0, %v161_v27 }
 0x179   :  { %v3479_v34 = vpop.f32.mrb[0].mxu1 }
 0x17a   :  { %v365_v35 = vsel %vm170_vm0, %v3479_v34, 0.0  ;;  %v3483_v36 = vpop.f32.mrb[1].mxu1 }
 0x17b   :  { %v364_v37 = vsel %vm170_vm0, %v3483_v36, 0.0 }
 0x17c   :  { %v366_v40 = vadd.f32 %v365_v35, %v364_v37 }
 0x17d   :  { %v3528_v43 = vpop.f32.mrb[2].mxu1 }
 0x17e   :  { %v295_v46 = vpop.f32.mrb[3].mxu1  ;;  %v369_v50 = vsel %vm170_vm0, %v3528_v43, 0.0 }
 0x17f   :  { %v367_v48 = vsel %vm170_vm0, %v295_v46, 0.0 }
 0x180   :  { %v368_v49 = vadd.f32 %v367_v48, %v366_v40 }
 0x181   :  { %v2737_v51 = vpop.f32.mrb[4].mxu1 }
 0x182   :  { %v305_v52 = vpop.f32.mrb[5].mxu1  ;;  %v370_v53 = vadd.f32 %v369_v50, %v368_v49  ;;  %v373_v56 = vsel %vm170_vm0, %v2737_v51, 0.0 }
 0x183   :  { %v371_v54 = vsel %vm170_vm0, %v305_v52, 0.0 }
 0x184   :  { %v372_v55 = vadd.f32 %v371_v54, %v370_v53 }
 0x185   :  { %v2740_v57 = vpop.f32.mrb[6].mxu1 }
 0x186   :  { %v315_v60 = vpop.f32.mrb[7].mxu1  ;;  %v374_v61 = vadd.f32 %v373_v56, %v372_v55  ;;  %v377_v1 = vsel %vm170_vm0, %v2740_v57, 0.0 }
 0x187   :  { %v375_v63 = vsel %vm170_vm0, %v315_v60, 0.0 }
 0x188   :  { %v376_v0 = vadd.f32 %v375_v63, %v374_v61 }
 0x189   :  { %v2743_v2 = vpop.f32.mrb[8].mxu1 }
 0x18a   :  { %v325_v3 = vpop.f32.mrb[9].mxu1  ;;  %v378_v4 = vadd.f32 %v377_v1, %v376_v0  ;;  %v381_v7 = vsel %vm170_vm0, %v2743_v2, 0.0 }
 0x18b   :  { %v379_v5 = vsel %vm170_vm0, %v325_v3, 0.0 }
 0x18c   :  { %v380_v6 = vadd.f32 %v379_v5, %v378_v4 }
 0x18d   :  { %v2746_v8 = vpop.f32.mrb[10].mxu1 }
 0x18e   :  { %v335_v9 = vpop.f32.mrb[11].mxu1  ;;  %v382_v10 = vadd.f32 %v381_v7, %v380_v6  ;;  %v385_v13 = vsel %vm170_vm0, %v2746_v8, 0.0 }
 0x18f   :  { %v383_v11 = vsel %vm170_vm0, %v335_v9, 0.0 }
 0x190   :  { %v384_v12 = vadd.f32 %v383_v11, %v382_v10 }
 0x191   :  { %v2749_v14 = vpop.f32.mrb[12].mxu1 }
 0x192   :  { %v345_v15 = vpop.f32.mrb[13].mxu1  ;;  %v386_v16 = vadd.f32 %v385_v13, %v384_v12  ;;  %v389_v19 = vsel %vm170_vm0, %v2749_v14, 0.0 }
 0x193   :  { %v387_v17 = vsel %vm170_vm0, %v345_v15, 0.0 }
 0x194   :  { %v388_v18 = vadd.f32 %v387_v17, %v386_v16 }
 0x195   :  { %v2752_v20 = vpop.f32.mrb[14].mxu1 }
 0x196   :  { %v355_v21 = vpop.f32.mrb[15].mxu1  ;;  %v390_v22 = vadd.f32 %v389_v19, %v388_v18  ;;  %v393_v25 = vsel %vm170_vm0, %v2752_v20, 0.0 }
 0x197   :  { %v391_v23 = vsel %vm170_vm0, %v355_v21, 0.0 }
 0x198   :  { %v392_v24 = vadd.f32 %v391_v23, %v390_v22 }
 0x19a   :  { %v394_v26 = vadd.f32 %v393_v25, %v392_v24 }
 0x19c   :  { %v395_v27 = vrot.slane %v394_v26, 4 }
 0x19e   :  { %v396_v28 = vadd.f32 %v395_v27, %v394_v26 }
 0x1a0   :  { %v397_v29 = vrot.slane %v396_v28, 2 }
 0x1a2   :  { %v398_v30 = vadd.f32 %v397_v29, %v396_v28 }
 0x1a4   :  { %v399_v31 = vrot.slane %v398_v30, 1 }
 0x1a6   :  { %v400_v32 = vadd.f32 %v399_v31, %v398_v30 }
 0x1a8   :  { %v402_v33 = vmul.f32 0.0078125, %v400_v32 }
 0x1aa   :  { %v3549_v35 = vsub.f32 %v3483_v36, %v402_v33  ;;  %v3552_v37 = vsub.f32 %v3479_v34, %v402_v33  ;;  %v3554_v38 = vsub.f32 %v295_v46, %v402_v33  ;;  %v3557_v39 = vsub.f32 %v3528_v43, %v402_v33 }
 0x1ab   :  { %v3559_v40 = vsub.f32 %v305_v52, %v402_v33  ;;  %v3561_v42 = vsub.f32 %v2737_v51, %v402_v33  ;;  %v3563_v44 = vsub.f32 %v315_v60, %v402_v33  ;;  %v3565_v45 = vsub.f32 %v2740_v57, %v402_v33 }
 0x1ac   :  { %v3567_v47 = vsub.f32 %v325_v3, %v402_v33  ;;  %v3569_v36 = vsub.f32 %v2743_v2, %v402_v33  ;;  %v3571_v48 = vsub.f32 %v335_v9, %v402_v33  ;;  %v3573_v34 = vsub.f32 %v2746_v8, %v402_v33 }
 0x1ad   :  { %v3575_v46 = vsub.f32 %v345_v15, %v402_v33  ;;  %v3577_v43 = vsub.f32 %v2749_v14, %v402_v33  ;;  %v3579_v49 = vsub.f32 %v355_v21, %v402_v33  ;;  %v3581_v50 = vsub.f32 %v2752_v20, %v402_v33 }
 0x1ae   :  { %v419_v51 = vmul.f32 %v3549_v35, %v3549_v35  ;;  %v420_v52 = vmul.f32 %v3552_v37, %v3552_v37  ;;  %v421_v53 = vmul.f32 %v3554_v38, %v3554_v38  ;;  %v422_v54 = vmul.f32 %v3557_v39, %v3557_v39 }
 0x1af   :  { %v423_v58 = vmul.f32 %v3559_v40, %v3559_v40  ;;  %v424_v61 = vmul.f32 %v3561_v42, %v3561_v42  ;;  %v425_v1 = vmul.f32 %v3563_v44, %v3563_v44  ;;  %v426_v4 = vmul.f32 %v3565_v45, %v3565_v45 }
 0x1b0   :  { %v435_v55 = vsel %vm170_vm0, %v419_v51, 0.0  ;;  %v436_v56 = vsel %vm170_vm0, %v420_v52, 0.0  ;;  %v438_v59 = vsel %vm170_vm0, %v421_v53, 0.0  ;;  %v440_v63 = vsel %vm170_vm0, %v422_v54, 0.0 }
 0x1b1   :  { %v437_v57 = vadd.f32 %v436_v56, %v435_v55  ;;  %v442_v2 = vsel %vm170_vm0, %v423_v58, 0.0  ;;  %v444_v5 = vsel %vm170_vm0, %v424_v61, 0.0  ;;  %v427_v7 = vmul.f32 %v3567_v47, %v3567_v47 }
 0x1b2   :  { %v446_v8 = vsel %vm170_vm0, %v425_v1, 0.0  ;;  %v428_v10 = vmul.f32 %v3569_v36, %v3569_v36  ;;  %v448_v11 = vsel %vm170_vm0, %v426_v4, 0.0  ;;  %v429_v13 = vmul.f32 %v3571_v48, %v3571_v48 }
 0x1b3   :  { %v439_v60 = vadd.f32 %v438_v59, %v437_v57  ;;  %v450_v14 = vsel %vm170_vm0, %v427_v7, 0.0  ;;  %v430_v16 = vmul.f32 %v3573_v34, %v3573_v34  ;;  %v431_v19 = vmul.f32 %v3575_v46, %v3575_v46 }
 0x1b4   :  { %v452_v17 = vsel %vm170_vm0, %v428_v10, 0.0  ;;  %v454_v20 = vsel %vm170_vm0, %v429_v13, 0.0  ;;  %v432_v22 = vmul.f32 %v3577_v43, %v3577_v43  ;;  %v433_v25 = vmul.f32 %v3579_v49, %v3579_v49  ;;  %v2534_v13 = vld [vmem:[#allocation6] ss:$0 sm:$0xff] }
 0x1b5   :  { %v441_v0 = vadd.f32 %v440_v63, %v439_v60  ;;  %v456_v23 = vsel %vm170_vm0, %v430_v16, 0.0  ;;  %v458_v26 = vsel %vm170_vm0, %v431_v19, 0.0  ;;  %v434_v28 = vmul.f32 %v3581_v50, %v3581_v50 }
 0x1b6   :  { %v460_v29 = vsel %vm170_vm0, %v432_v22, 0.0  ;;  %v462_v31 = vsel %vm170_vm0, %v433_v25, 0.0 }
 0x1b7   :  { %v443_v3 = vadd.f32 %v442_v2, %v441_v0  ;;  %v464_v33 = vsel %vm170_vm0, %v434_v28, 0.0 }
 0x1b9   :  { %v445_v6 = vadd.f32 %v444_v5, %v443_v3 }
 0x1bb   :  { %v447_v9 = vadd.f32 %v446_v8, %v445_v6  ;;  %v2533_v6 = vld [vmem:[%s4840_s2] ss:$0 sm:$0xff] }
 0x1bd   :  { %v449_v12 = vadd.f32 %v448_v11, %v447_v9 }
 0x1bf   :  { %v451_v15 = vadd.f32 %v450_v14, %v449_v12 }
 0x1c1   :  { %v453_v18 = vadd.f32 %v452_v17, %v451_v15 }
 0x1c3   :  { %v455_v21 = vadd.f32 %v454_v20, %v453_v18 }
 0x1c5   :  { %v457_v24 = vadd.f32 %v456_v23, %v455_v21 }
 0x1c7   :  { %v459_v27 = vadd.f32 %v458_v26, %v457_v24 }
 0x1c9   :  { %v461_v30 = vadd.f32 %v460_v29, %v459_v27 }
 0x1cb   :  { %v463_v32 = vadd.f32 %v462_v31, %v461_v30 }
 0x1cd   :  { %v465_v51 = vadd.f32 %v464_v33, %v463_v32 }
 0x1cf   :  { %v466_v52 = vrot.slane %v465_v51, 4 }
 0x1d1   :  { %v467_v53 = vadd.f32 %v466_v52, %v465_v51 }
 0x1d3   :  { %v468_v54 = vrot.slane %v467_v53, 2 }
 0x1d5   :  { %v469_v55 = vadd.f32 %v468_v54, %v467_v53 }
 0x1d7   :  { %v470_v56 = vrot.slane %v469_v55, 1 }
 0x1d9   :  { %v471_v57 = vadd.f32 %v470_v56, %v469_v55 }
 0x1db   :  { %v472_v58 = vmul.f32 0.0078125, %v471_v57 }
 0x1dd   :  { %v473_v59 = vadd.f32 1e-05, %v472_v58 }
 0x1df   :  { %3015 = vrsqrt.f32 %v473_v59 }
 0x1e9   :  { %v3016_v60 = vpop.eup %3015 }
 0x1ea   :  { %v475_v61 = vmul.f32 %v3016_v60, %v3549_v35  ;;  %v476_v63 = vmul.f32 %v3016_v60, %v3552_v37  ;;  %v477_v0 = vmul.f32 %v3016_v60, %v3554_v38  ;;  %v478_v1 = vmul.f32 %v3016_v60, %v3557_v39 }
 0x1eb   :  { %v479_v2 = vmul.f32 %v3016_v60, %v3559_v40  ;;  %v480_v3 = vmul.f32 %v3016_v60, %v3561_v42  ;;  %v481_v4 = vmul.f32 %v3016_v60, %v3563_v44  ;;  %v482_v5 = vmul.f32 %v3016_v60, %v3565_v45 }
 0x1ec   :  { %v483_v35 = vmul.f32 %v3016_v60, %v3567_v47  ;;  %v484_v37 = vmul.f32 %v3016_v60, %v3569_v36  ;;  %v485_v38 = vmul.f32 %v3016_v60, %v3571_v48  ;;  %v486_v39 = vmul.f32 %v3016_v60, %v3573_v34 }
 0x1ed   :  { %v487_v40 = vmul.f32 %v3016_v60, %v3575_v46  ;;  %v488_v42 = vmul.f32 %v3016_v60, %v3577_v43  ;;  %v489_v44 = vmul.f32 %v3016_v60, %v3579_v49  ;;  %v490_v45 = vmul.f32 %v3016_v60, %v3581_v50 }
 0x1ee   :  { %v498_v7 = vmul.f32 %v2533_v6, %v475_v61  ;;  %v499_v8 = vmul.f32 %v2533_v6, %v476_v63  ;;  %v500_v9 = vmul.f32 %v2533_v6, %v477_v0  ;;  %v501_v10 = vmul.f32 %v2533_v6, %v478_v1 }
 0x1ef   :  { %v502_v11 = vmul.f32 %v2533_v6, %v479_v2  ;;  %v503_v47 = vmul.f32 %v2533_v6, %v480_v3  ;;  %v504_v12 = vmul.f32 %v2533_v6, %v481_v4  ;;  %v505_v36 = vmul.f32 %v2533_v6, %v482_v5  ;;  %v607_v2 = vld [vmem:[#allocation8 + $0x10] sm:$0xff]  ;;  %v608_v3 = vld [vmem:[#allocation8 + $0x18] sm:$0xff] }
 0x1f0   :  { %v506_v48 = vmul.f32 %v2533_v6, %v483_v35  ;;  %v507_v14 = vmul.f32 %v2533_v6, %v484_v37  ;;  %v508_v34 = vmul.f32 %v2533_v6, %v485_v38  ;;  %v509_v15 = vmul.f32 %v2533_v6, %v486_v39  ;;  %v609_v35 = vld [vmem:[#allocation8 + $0x20] sm:$0xff]  ;;  %v610_v37 = vld [vmem:[#allocation8 + $0x28] sm:$0xff] }
 0x1f1   :  { %v510_v46 = vmul.f32 %v2533_v6, %v487_v40  ;;  %v511_v16 = vmul.f32 %v2533_v6, %v488_v42  ;;  %v512_v43 = vmul.f32 %v2533_v6, %v489_v44  ;;  %v513_v17 = vmul.f32 %v2533_v6, %v490_v45  ;;  %v611_v42 = vld [vmem:[#allocation8 + $0x30] sm:$0xff]  ;;  %v612_v44 = vld [vmem:[#allocation8 + $0x38] sm:$0xff] }
 0x1f2   :  { %v521_v49 = vadd.f32 %v2534_v13, %v498_v7  ;;  %v522_v18 = vadd.f32 %v2534_v13, %v499_v8  ;;  %v523_v50 = vadd.f32 %v2534_v13, %v500_v9  ;;  %v524_v19 = vadd.f32 %v2534_v13, %v501_v10  ;;  %v1041_v9 = vld [vmem:[#allocation8 + $0x80] sm:$0xff]  ;;  %v1042_v10 = vld [vmem:[#allocation8 + $0x88] sm:$0xff] }
 0x1f3   :  { %v525_v20 = vadd.f32 %v2534_v13, %v502_v11  ;;  %v526_v21 = vadd.f32 %v2534_v13, %v503_v47  ;;  %v527_v22 = vadd.f32 %v2534_v13, %v504_v12  ;;  %v528_v23 = vadd.f32 %v2534_v13, %v505_v36 }
 0x1f4   :  { %v529_v24 = vadd.f32 %v2534_v13, %v506_v48  ;;  %v530_v25 = vadd.f32 %v2534_v13, %v507_v14  ;;  %v531_v26 = vadd.f32 %v2534_v13, %v508_v34  ;;  %v532_v27 = vadd.f32 %v2534_v13, %v509_v15 }
 0x1f5   :  { %v533_v28 = vadd.f32 %v2534_v13, %v510_v46  ;;  %v534_v29 = vadd.f32 %v2534_v13, %v511_v16  ;;  %v535_v30 = vadd.f32 %v2534_v13, %v512_v43  ;;  %v536_v31 = vadd.f32 %v2534_v13, %v513_v17  ;;  %v1043_v16 = vld [vmem:[#allocation8 + $0x90] sm:$0xff]  ;;  %v1044_v43 = vld [vmem:[#allocation8 + $0x98] sm:$0xff] }
 0x1f6   :  { %v538_v32 = vmax.f32 %v522_v18, 0.0  ;;  %v539_v33 = vmax.f32 %v523_v50, 0.0  ;;  %v540_v51 = vmax.f32 %v524_v19, 0.0  ;;  %v541_v52 = vmax.f32 %v525_v20, 0.0  ;;  %v1045_v50 = vld [vmem:[#allocation8 + $0xa0] sm:$0xff]  ;;  %v1046_v19 = vld [vmem:[#allocation8 + $0xa8] sm:$0xff] }
 0x1f7   :  { %v542_v53 = vmax.f32 %v526_v21, 0.0  ;;  %v543_v54 = vmax.f32 %v527_v22, 0.0  ;;  %v544_v55 = vmax.f32 %v528_v23, 0.0  ;;  %v545_v56 = vmax.f32 %v529_v24, 0.0  ;;  %v1047_v23 = vld [vmem:[#allocation8 + $0xb0] sm:$0xff]  ;;  %v1048_v24 = vld [vmem:[#allocation8 + $0xb8] sm:$0xff] }
 0x1f8   :  { %v546_v57 = vmax.f32 %v530_v25, 0.0  ;;  %v547_v58 = vmax.f32 %v531_v26, 0.0  ;;  %v548_v59 = vmax.f32 %v532_v27, 0.0  ;;  %v549_v60 = vmax.f32 %v533_v28, 0.0  ;;  %574 = vst.msk [vmem:[#allocation2 + $0x10] sm:$0xff] %vm170_vm0, %v538_v32  ;;  %575 = vst.msk [vmem:[#allocation2 + $0x18] sm:$0xff] %vm170_vm0, %v539_v33 }
 0x1f9   :  { %576 = vst.msk [vmem:[#allocation2 + $0x20] sm:$0xff] %vm170_vm0, %v540_v51  ;;  %577 = vst.msk [vmem:[#allocation2 + $0x28] sm:$0xff] %vm170_vm0, %v541_v52  ;;  %v550_v61 = vmax.f32 %v534_v29, 0.0  ;;  %v551_v63 = vmax.f32 %v535_v30, 0.0  ;;  %v552_v0 = vmax.f32 %v536_v31, 0.0  ;;  %v537_v1 = vmax.f32 %v521_v49, 0.0 }
 0x1fa   :  { %578 = vst.msk [vmem:[#allocation2 + $0x30] sm:$0xff] %vm170_vm0, %v542_v53  ;;  %579 = vst.msk [vmem:[#allocation2 + $0x38] sm:$0xff] %vm170_vm0, %v543_v54  ;;  %v2909_v6 = vpack.c.bf16 %v608_v3, %v607_v2  ;;  %v2913_v39 = vpack.c.bf16 %v610_v37, %v609_v35  ;;  %v2917_v7 = vpack.c.bf16 %v612_v44, %v611_v42  ;;  %v1447_v37 = vld [vmem:[#allocation12 + $0x8] sm:$0xff]  ;;  %v1448_v42 = vld [vmem:[#allocation12 + $0x10] sm:$0xff] }
 0x1fb   :  { %580 = vst.msk [vmem:[#allocation2 + $0x40] sm:$0xff] %vm170_vm0, %v544_v55  ;;  %581 = vst.msk [vmem:[#allocation2 + $0x58] sm:$0xff] %vm170_vm0, %v545_v56  ;;  %v2921_v11 = vpack.c.bf16 %v1042_v10, %v1041_v9  ;;  %v2925_v49 = vpack.c.bf16 %v1044_v43, %v1043_v16  ;;  %v2929_v21 = vpack.c.bf16 %v1046_v19, %v1045_v50  ;;  %v1450_v9 = vld [vmem:[#allocation12 + $0x20] sm:$0xff]  ;;  %v1452_v10 = vld [vmem:[#allocation12 + $0x30] sm:$0xff] }
 0x1fc   :  { %583 = vst.msk [vmem:[#allocation2 + $0x68] sm:$0xff] %vm170_vm0, %v547_v58  ;;  %584 = vst.msk [vmem:[#allocation2 + $0x70] sm:$0xff] %vm170_vm0, %v548_v59  ;;  %v2933_v26 = vpack.c.bf16 %v1048_v24, %v1047_v23  ;;  %v1948_v43 = vld [vmem:[#allocation14 + $0x8] sm:$0xff] }
 0x1fd   :  { %585 = vst.msk [vmem:[#allocation2 + $0x78] sm:$0xff] %vm170_vm0, %v549_v60  ;;  %582 = vst.msk [vmem:[#allocation2 + $0x60] sm:$0xff] %vm170_vm0, %v546_v57 }
 0x1fe   :  { %586 = vst.msk [vmem:[#allocation2 + $0x80] sm:$0xff] %vm170_vm0, %v550_v61  ;;  %587 = vst.msk [vmem:[#allocation2 + $0x88] sm:$0xff] %vm170_vm0, %v551_v63 }
 0x1ff   :  { %588 = vst.msk [vmem:[#allocation2 + $0x90] sm:$0xff] %vm170_vm0, %v552_v0  ;;  %573 = vst.msk [vmem:[#allocation2 + $0x8] sm:$0xff] %vm170_vm0, %v537_v1  ;;  %v614_v4 = vld [vmem:[#allocation2 + $0x10] sm:$0xff]  ;;  %v615_v38 = vld [vmem:[#allocation2 + $0x18] sm:$0xff] }
 0x200   :  { %v616_v40 = vld [vmem:[#allocation2 + $0x20] sm:$0xff]  ;;  %v617_v45 = vld [vmem:[#allocation2 + $0x28] sm:$0xff]  ;;  %v591_v20 = vld [vmem:[#allocation2 + $0x17] sm:$0xff] }
 0x201   :  { %v618_v8 = vld [vmem:[#allocation2 + $0x30] sm:$0xff]  ;;  %v592_v22 = vld [vmem:[#allocation2 + $0x1f] sm:$0xff]  ;;  %v593_v25 = vld [vmem:[#allocation2 + $0x27] sm:$0xff] }
 0x202   :  { %v620_v47 = vld [vmem:[#allocation2 + $0x40] sm:$0xff]  ;;  %v621_v12 = vld [vmem:[#allocation2 + $0x58] sm:$0xff]  ;;  %v594_v27 = vld [vmem:[#allocation2 + $0x2f] sm:$0xff] }
 0x203   :  { %v623_v13 = vld [vmem:[#allocation2 + $0x68] sm:$0xff]  ;;  %v624_v48 = vld [vmem:[#allocation2 + $0x70] sm:$0xff]  ;;  %v596_v29 = vld [vmem:[#allocation2 + $0x3f] sm:$0xff] }
 0x204   :  { %v622_v36 = vld [vmem:[#allocation2 + $0x60] sm:$0xff]  ;;  %v625_v14 = vld [vmem:[#allocation2 + $0x78] sm:$0xff]  ;;  %v600_v33 = vld [vmem:[#allocation2 + $0x6f] sm:$0xff] }
 0x205   :  { %v626_v34 = vld [vmem:[#allocation2 + $0x80] sm:$0xff]  ;;  %v627_v15 = vld [vmem:[#allocation2 + $0x88] sm:$0xff]  ;;  %v595_v28 = vld [vmem:[#allocation2 + $0x37] sm:$0xff] }
 0x206   :  { %v613_v5 = vld [vmem:[#allocation2 + $0x8] sm:$0xff]  ;;  %v628_v46 = vld [vmem:[#allocation2 + $0x90] sm:$0xff]  ;;  %v598_v31 = vld [vmem:[#allocation2 + $0x5f] sm:$0xff] }
 0x207   :  { %2769 = vmatprep.mubr.msk.f32.mxu1 %vm170_vm0, %v613_v5  ;;  %v589_v17 = vld [vmem:[#allocation2 + $0x7] sm:$0xff]  ;;  %v590_v18 = vld [vmem:[#allocation2 + $0xf] sm:$0xff]  ;;  %v597_v30 = vld [vmem:[#allocation2 + $0x57] sm:$0xff] }
 0x208   :  { %2770 = vmatmul.mubr.msk.f32.vlgmr.msra.gmra.mrb[16].mxu1 %vm170_vm0, %v614_v4  ;;  %v599_v32 = vld [vmem:[#allocation2 + $0x67] sm:$0xff]  ;;  %v601_v51 = vld [vmem:[#allocation2 + $0x77] sm:$0xff]  ;;  %v602_v52 = vld [vmem:[#allocation2 + $0x7f] sm:$0xff] }
 0x209   :  { %2908 = vmatpush3.bf16.msra.mxu1 %v3535_v62  ;;  %2772 = vmatprep.mubr.msk.f32.mxu1 %vm170_vm0, %v615_v38  ;;  %v619_v62 = vld [vmem:[#allocation2 + $0x38] sm:$0xff]  ;;  %v603_v53 = vld [vmem:[#allocation2 + $0x87] sm:$0xff]  ;;  %v604_v54 = vld [vmem:[#allocation2 + $0x8f] sm:$0xff] }
 0x20a   :  { %2910 = vmatprep.subr.bf16.mxu1 %v2909_v6  ;;  %v1024_v55 = vld [vmem:[#allocation2 + $0x9] sm:$0xff]  ;;  %v1025_v56 = vld [vmem:[#allocation2 + $0x11] sm:$0xff]  ;;  %v1026_v57 = vld [vmem:[#allocation2 + $0x19] sm:$0xff] }
 0x20b   :  { %v1027_v58 = vld [vmem:[#allocation2 + $0x21] sm:$0xff]  ;;  %v1028_v59 = vld [vmem:[#allocation2 + $0x29] sm:$0xff]  ;;  %v1029_v60 = vld [vmem:[#allocation2 + $0x31] sm:$0xff] }
 0x20c   :  { %2773 = vmatmul.mubr.msk.f32.gmra.mrb[18].mxu1 %vm170_vm0, %v616_v40  ;;  %v1030_v61 = vld [vmem:[#allocation2 + $0x39] sm:$0xff]  ;;  %v1031_v63 = vld [vmem:[#allocation2 + $0x41] sm:$0xff]  ;;  %v1034_v2 = vld [vmem:[#allocation2 + $0x69] sm:$0xff] }
 0x20d   :  { %2775 = vmatprep.mubr.msk.f32.mxu1 %vm170_vm0, %v617_v45  ;;  %2912 = vmatpush3.bf16.msra.mxu1 %v2909_v6  ;;  %v1032_v0 = vld [vmem:[#allocation2 + $0x59] sm:$0xff]  ;;  %v1033_v1 = vld [vmem:[#allocation2 + $0x61] sm:$0xff]  ;;  %v1035_v3 = vld [vmem:[#allocation2 + $0x71] sm:$0xff] }
 0x20e   :  { %2914 = vmatprep.subr.bf16.mxu1 %v2913_v39  ;;  %v1036_v4 = vld [vmem:[#allocation2 + $0x79] sm:$0xff]  ;;  %v1037_v5 = vld [vmem:[#allocation2 + $0x81] sm:$0xff]  ;;  %v1038_v6 = vld [vmem:[#allocation2 + $0x89] sm:$0xff] }
 0x20f   :  { %v1039_v35 = vld [vmem:[#allocation2 + $0x91] sm:$0xff]  ;;  %v1449_v38 = vld [vmem:[#allocation12 + $0x18] sm:$0xff]  ;;  %v1446_v40 = vld [vmem:[#allocation12] sm:$0xff] }
 0x210   :  { %2776 = vmatmul.mubr.msk.f32.gmra.mrb[20].mxu1 %vm170_vm0, %v618_v8  ;;  %v2939_v44 = vpack.c.bf16 %v1448_v42, %v1446_v40  ;;  %v1451_v45 = vld [vmem:[#allocation12 + $0x28] sm:$0xff] }
 0x211   :  { %2778 = vmatprep.mubr.msk.f32.mxu1 %vm170_vm0, %v619_v62  ;;  %2916 = vmatpush3.bf16.msra.mxu1 %v2913_v39  ;;  %v2937_v39 = vpack.c.bf16 %v1449_v38, %v1447_v37  ;;  %v2943_v62 = vpack.c.bf16 %v1452_v10, %v1450_v9 }
 0x212   :  { %2918 = vmatprep.subr.bf16.mxu1 %v2917_v7 }
 0x213   :  { %2938 = vmatprep.subr.bf16.mxu0 %v2937_v39 }
 0x214   :  { %2779 = vmatmul.mubr.msk.f32.gmra.mrb[22].mxu1 %vm170_vm0, %v620_v47  ;;  %2940 = vmatpush1.bf16.msra.mxu0 %v2939_v44  ;;  %v1457_v47 = vld [vmem:[#allocation12 + $0x58] sm:$0xff] }
 0x215   :  { %2781 = vmatprep.mubr.msk.f32.mxu1 %vm170_vm0, %v621_v12  ;;  %2920 = vmatpush3.bf16.msra.mxu1 %v2917_v7  ;;  %v1453_v7 = vld [vmem:[#allocation12 + $0x38] sm:$0xff] }
 0x216   :  { %2922 = vmatprep.subr.bf16.mxu1 %v2921_v11  ;;  %v2941_v8 = vpack.c.bf16 %v1453_v7, %v1451_v45 }
 0x218   :  { %2782 = vmatmul.mubr.msk.f32.gmra.mrb[24].mxu1 %vm170_vm0, %v622_v36  ;;  %2942 = vmatprep.subr.bf16.mxu0 %v2941_v8  ;;  %v1454_v36 = vld [vmem:[#allocation12 + $0x40] sm:$0xff] }
 0x219   :  { %2784 = vmatprep.mubr.msk.f32.mxu1 %vm170_vm0, %v623_v13  ;;  %2944 = vmatpush1.bf16.msra.mxu0 %v2943_v62  ;;  %v1456_v13 = vld [vmem:[#allocation12 + $0x50] sm:$0xff] }
 0x21c   :  { %2785 = vmatmul.mubr.msk.f32.gmra.mrb[26].mxu1 %vm170_vm0, %v624_v48  ;;  %v1459_v48 = vld [vmem:[#allocation12 + $0x68] sm:$0xff] }
 0x21d   :  { %2787 = vmatprep.mubr.msk.f32.mxu1 %vm170_vm0, %v625_v14  ;;  %v2947_v14 = vpack.c.bf16 %v1456_v13, %v1454_v36 }
 0x220   :  { %2788 = vmatmul.mubr.msk.f32.gmra.mrb[28].mxu1 %vm170_vm0, %v626_v34  ;;  %v1461_v34 = vld [vmem:[#allocation12 + $0x78] sm:$0xff] }
 0x221   :  { %2790 = vmatprep.mubr.msk.f32.mxu1 %vm170_vm0, %v627_v15  ;;  %v1458_v15 = vld [vmem:[#allocation12 + $0x60] sm:$0xff]  ;;  %v2949_v16 = vpack.c.bf16 %v1461_v34, %v1459_v48 }
 0x224   :  { %2791 = vmatmul.mubr.msk.f32.gmra.mrb[30].mxu1 %vm170_vm0, %v628_v46  ;;  %v1460_v46 = vld [vmem:[#allocation12 + $0x70] sm:$0xff] }
 0x225   :  { %2809 = vmatprep.mubr.msk.f32.mxu1 %vm170_vm0, %v589_v17  ;;  %v1950_v17 = vld [vmem:[#allocation14 + $0x18] sm:$0xff] }
 0x228   :  { %2810 = vmatmul.mubr.msk.f32.vlgmr.msra.gmra.mrb[16].mxu1 %vm170_vm0, %v590_v18  ;;  %v2953_v18 = vpack.c.bf16 %v1950_v17, %v1948_v43 }
 0x229   :  { %2924 = vmatpush3.bf16.msra.mxu1 %v2921_v11  ;;  %2812 = vmatprep.mubr.msk.f32.mxu1 %vm170_vm0, %v591_v20  ;;  %v1455_v11 = vld [vmem:[#allocation12 + $0x48] sm:$0xff] }
 0x22a   :  { %2926 = vmatprep.subr.bf16.mxu1 %v2925_v49  ;;  %v2945_v12 = vpack.c.bf16 %v1457_v47, %v1455_v11 }
 0x22c   :  { %2813 = vmatmul.mubr.msk.f32.gmra.mrb[18].mxu1 %vm170_vm0, %v592_v22  ;;  %2946 = vmatprep.subr.bf16.mxu0 %v2945_v12 }
 0x22d   :  { %2815 = vmatprep.mubr.msk.f32.mxu1 %vm170_vm0, %v593_v25  ;;  %2928 = vmatpush3.bf16.msra.mxu1 %v2925_v49  ;;  %v2951_v49 = vpack.c.bf16 %v1460_v46, %v1458_v15 }
 0x22e   :  { %2930 = vmatprep.subr.bf16.mxu1 %v2929_v21  ;;  %2948 = vmatpush1.bf16.msra.mxu0 %v2947_v14 }
 0x22f   :  { %2950 = vmatprep.subr.bf16.mxu0 %v2949_v16 }
 0x230   :  { %2816 = vmatmul.mubr.msk.f32.gmra.mrb[20].mxu1 %vm170_vm0, %v594_v27 }
 0x231   :  { %2818 = vmatprep.mubr.msk.f32.mxu1 %vm170_vm0, %v595_v28  ;;  %2932 = vmatpush3.bf16.msra.mxu1 %v2929_v21 }
 0x232   :  { %2934 = vmatprep.subr.bf16.mxu1 %v2933_v26  ;;  %2952 = vmatpush1.bf16.msra.mxu0 %v2951_v49 }
 0x233   :  { %2954 = vmatprep.subr.bf16.mxu0 %v2953_v18 }
 0x234   :  { %2819 = vmatmul.mubr.msk.f32.gmra.mrb[22].mxu1 %vm170_vm0, %v596_v29 }
 0x235   :  { %2821 = vmatprep.mubr.msk.f32.mxu1 %vm170_vm0, %v597_v30  ;;  %2936 = vmatpush3.bf16.msra.mxu1 %v2933_v26 }
 0x238   :  { %2822 = vmatmul.mubr.msk.f32.gmra.mrb[24].mxu1 %vm170_vm0, %v598_v31 }
 0x239   :  { %2824 = vmatprep.mubr.msk.f32.mxu1 %vm170_vm0, %v599_v32 }
 0x23c   :  { %2825 = vmatmul.mubr.msk.f32.gmra.mrb[26].mxu1 %vm170_vm0, %v600_v33 }
 0x23d   :  { %2827 = vmatprep.mubr.msk.f32.mxu1 %vm170_vm0, %v601_v51 }
 0x240   :  { %2828 = vmatmul.mubr.msk.f32.gmra.mrb[28].mxu1 %vm170_vm0, %v602_v52 }
 0x241   :  { %2830 = vmatprep.mubr.msk.f32.mxu1 %vm170_vm0, %v603_v53 }
 0x244   :  { %2831 = vmatmul.mubr.msk.f32.gmra.mrb[30].mxu1 %vm170_vm0, %v604_v54 }
 0x245   :  { %2849 = vmatprep.mubr.msk.f32.mxu1 %vm170_vm0, %v1024_v55 }
 0x248   :  { %2850 = vmatmul.mubr.msk.f32.vlgmr.msra.gmra.mrb[16].mxu1 %vm170_vm0, %v1025_v56 }
 0x249   :  { %2852 = vmatprep.mubr.msk.f32.mxu1 %vm170_vm0, %v1026_v57 }
 0x24c   :  { %2853 = vmatmul.mubr.msk.f32.gmra.mrb[18].mxu1 %vm170_vm0, %v1027_v58 }
 0x24d   :  { %2855 = vmatprep.mubr.msk.f32.mxu1 %vm170_vm0, %v1028_v59 }
 0x250   :  { %2856 = vmatmul.mubr.msk.f32.gmra.mrb[20].mxu1 %vm170_vm0, %v1029_v60 }
 0x251   :  { %2858 = vmatprep.mubr.msk.f32.mxu1 %vm170_vm0, %v1030_v61 }
 0x254   :  { %2859 = vmatmul.mubr.msk.f32.gmra.mrb[22].mxu1 %vm170_vm0, %v1031_v63 }
 0x255   :  { %2861 = vmatprep.mubr.msk.f32.mxu1 %vm170_vm0, %v1032_v0 }
 0x258   :  { %2862 = vmatmul.mubr.msk.f32.gmra.mrb[24].mxu1 %vm170_vm0, %v1033_v1 }
 0x259   :  { %2864 = vmatprep.mubr.msk.f32.mxu1 %vm170_vm0, %v1034_v2 }
 0x25c   :  { %2865 = vmatmul.mubr.msk.f32.gmra.mrb[26].mxu1 %vm170_vm0, %v1035_v3 }
 0x25d   :  { %2867 = vmatprep.mubr.msk.f32.mxu1 %vm170_vm0, %v1036_v4 }
 0x260   :  { %2868 = vmatmul.mubr.msk.f32.gmra.mrb[28].mxu1 %vm170_vm0, %v1037_v5 }
 0x261   :  { %2870 = vmatprep.mubr.msk.f32.mxu1 %vm170_vm0, %v1038_v6 }
 0x264   :  { %2871 = vmatmul.mubr.msk.f32.gmra.mrb[30].mxu1 %vm170_vm0, %v1039_v35 }
 0x31b   :  { %v2851_v50 = vpop.f32.mrb[16].mxu1 }
 0x31c   :  { %v1259_v19 = vsel %vm170_vm0, %v2851_v50, 0.0  ;;  %v1163_v20 = vpop.f32.mrb[17].mxu1 }
 0x31d   :  { %v1258_v21 = vsel %vm170_vm0, %v1163_v20, 0.0 }
 0x31e   :  { %v1260_v22 = vadd.f32 %v1259_v19, %v1258_v21 }
 0x31f   :  { %v2854_v23 = vpop.f32.mrb[18].mxu1 }
 0x320   :  { %v1173_v24 = vpop.f32.mrb[19].mxu1  ;;  %v1263_v27 = vsel %vm170_vm0, %v2854_v23, 0.0 }
 0x321   :  { %v1261_v25 = vsel %vm170_vm0, %v1173_v24, 0.0 }
 0x322   :  { %v1262_v26 = vadd.f32 %v1261_v25, %v1260_v22 }
 0x323   :  { %v2857_v28 = vpop.f32.mrb[20].mxu1 }
 0x324   :  { %v1183_v29 = vpop.f32.mrb[21].mxu1  ;;  %v1264_v30 = vadd.f32 %v1263_v27, %v1262_v26  ;;  %v1267_v33 = vsel %vm170_vm0, %v2857_v28, 0.0 }
 0x325   :  { %v1265_v31 = vsel %vm170_vm0, %v1183_v29, 0.0 }
 0x326   :  { %v1266_v32 = vadd.f32 %v1265_v31, %v1264_v30 }
 0x327   :  { %v2860_v51 = vpop.f32.mrb[22].mxu1 }
 0x328   :  { %v1193_v52 = vpop.f32.mrb[23].mxu1  ;;  %v1268_v53 = vadd.f32 %v1267_v33, %v1266_v32  ;;  %v1271_v56 = vsel %vm170_vm0, %v2860_v51, 0.0 }
 0x329   :  { %v1269_v54 = vsel %vm170_vm0, %v1193_v52, 0.0 }
 0x32a   :  { %v1270_v55 = vadd.f32 %v1269_v54, %v1268_v53 }
 0x32b   :  { %v2863_v57 = vpop.f32.mrb[24].mxu1 }
 0x32c   :  { %v1203_v58 = vpop.f32.mrb[25].mxu1  ;;  %v1272_v59 = vadd.f32 %v1271_v56, %v1270_v55  ;;  %v1275_v63 = vsel %vm170_vm0, %v2863_v57, 0.0 }
 0x32d   :  { %v1273_v60 = vsel %vm170_vm0, %v1203_v58, 0.0 }
 0x32e   :  { %v1274_v61 = vadd.f32 %v1273_v60, %v1272_v59 }
 0x32f   :  { %v2866_v0 = vpop.f32.mrb[26].mxu1 }
 0x330   :  { %v1213_v1 = vpop.f32.mrb[27].mxu1  ;;  %v1276_v2 = vadd.f32 %v1275_v63, %v1274_v61  ;;  %v1279_v5 = vsel %vm170_vm0, %v2866_v0, 0.0 }
 0x331   :  { %v1277_v3 = vsel %vm170_vm0, %v1213_v1, 0.0 }
 0x332   :  { %v1278_v4 = vadd.f32 %v1277_v3, %v1276_v2 }
 0x333   :  { %v2869_v6 = vpop.f32.mrb[28].mxu1 }
 0x334   :  { %v1223_v35 = vpop.f32.mrb[29].mxu1  ;;  %v1280_v37 = vadd.f32 %v1279_v5, %v1278_v4  ;;  %v1283_v40 = vsel %vm170_vm0, %v2869_v6, 0.0 }
 0x335   :  { %v1281_v38 = vsel %vm170_vm0, %v1223_v35, 0.0 }
 0x336   :  { %v1282_v39 = vadd.f32 %v1281_v38, %v1280_v37 }
 0x337   :  { %v2872_v42 = vpop.f32.mrb[30].mxu1 }
 0x338   :  { %v1233_v44 = vpop.f32.mrb[31].mxu1  ;;  %v1284_v45 = vadd.f32 %v1283_v40, %v1282_v39  ;;  %v1287_v9 = vsel %vm170_vm0, %v2872_v42, 0.0 }
 0x339   :  { %v1285_v7 = vsel %vm170_vm0, %v1233_v44, 0.0 }
 0x33a   :  { %v1286_v8 = vadd.f32 %v1285_v7, %v1284_v45 }
 0x33c   :  { %v1288_v10 = vadd.f32 %v1287_v9, %v1286_v8 }
 0x33e   :  { %v1289_v62 = vrot.slane %v1288_v10, 4 }
 0x340   :  { %v1290_v11 = vadd.f32 %v1289_v62, %v1288_v10 }
 0x342   :  { %v1291_v47 = vrot.slane %v1290_v11, 2 }
 0x344   :  { %v1292_v12 = vadd.f32 %v1291_v47, %v1290_v11 }
 0x346   :  { %v1293_v36 = vrot.slane %v1292_v12, 1 }
 0x348   :  { %v1294_v13 = vadd.f32 %v1293_v36, %v1292_v12 }
 0x34a   :  { %v1295_v48 = vmul.f32 0.0078125, %v1294_v13 }
 0x34c   :  { %v3731_v14 = vsub.f32 %v1163_v20, %v1295_v48  ;;  %v3733_v34 = vsub.f32 %v2851_v50, %v1295_v48  ;;  %v3735_v15 = vsub.f32 %v1173_v24, %v1295_v48  ;;  %v3737_v46 = vsub.f32 %v2854_v23, %v1295_v48 }
 0x34d   :  { %v3739_v16 = vsub.f32 %v1183_v29, %v1295_v48  ;;  %v3741_v43 = vsub.f32 %v2857_v28, %v1295_v48  ;;  %v3743_v17 = vsub.f32 %v1193_v52, %v1295_v48  ;;  %v3745_v49 = vsub.f32 %v2860_v51, %v1295_v48 }
 0x34e   :  { %v3747_v18 = vsub.f32 %v1203_v58, %v1295_v48  ;;  %v3749_v19 = vsub.f32 %v2863_v57, %v1295_v48  ;;  %v3751_v20 = vsub.f32 %v1213_v1, %v1295_v48  ;;  %v3753_v50 = vsub.f32 %v2866_v0, %v1295_v48 }
 0x34f   :  { %v3755_v21 = vsub.f32 %v1223_v35, %v1295_v48  ;;  %v3757_v22 = vsub.f32 %v2869_v6, %v1295_v48  ;;  %v1310_v23 = vsub.f32 %v1233_v44, %v1295_v48  ;;  %v3759_v24 = vsub.f32 %v2872_v42, %v1295_v48 }
 0x350   :  { %v1312_v25 = vmul.f32 %v3731_v14, %v3731_v14  ;;  %v1313_v26 = vmul.f32 %v3733_v34, %v3733_v34  ;;  %v1314_v27 = vmul.f32 %v3735_v15, %v3735_v15  ;;  %v1315_v28 = vmul.f32 %v3737_v46, %v3737_v46 }
 0x351   :  { %v1316_v32 = vmul.f32 %v3739_v16, %v3739_v16  ;;  %v1317_v52 = vmul.f32 %v3741_v43, %v3741_v43  ;;  %v1318_v55 = vmul.f32 %v3743_v17, %v3743_v17  ;;  %v1319_v58 = vmul.f32 %v3745_v49, %v3745_v49 }
 0x352   :  { %v1328_v29 = vsel %vm170_vm0, %v1312_v25, 0.0  ;;  %v1329_v30 = vsel %vm170_vm0, %v1313_v26, 0.0  ;;  %v1331_v33 = vsel %vm170_vm0, %v1314_v27, 0.0  ;;  %v1333_v53 = vsel %vm170_vm0, %v1315_v28, 0.0 }
 0x353   :  { %v1330_v31 = vadd.f32 %v1329_v30, %v1328_v29  ;;  %v1335_v56 = vsel %vm170_vm0, %v1316_v32, 0.0  ;;  %v1337_v59 = vsel %vm170_vm0, %v1317_v52, 0.0  ;;  %v1320_v61 = vmul.f32 %v3747_v18, %v3747_v18 }
 0x354   :  { %v1339_v63 = vsel %vm170_vm0, %v1318_v55, 0.0  ;;  %v1321_v1 = vmul.f32 %v3749_v19, %v3749_v19  ;;  %v1341_v2 = vsel %vm170_vm0, %v1319_v58, 0.0  ;;  %v1322_v4 = vmul.f32 %v3751_v20, %v3751_v20 }
 0x355   :  { %v1332_v51 = vadd.f32 %v1331_v33, %v1330_v31  ;;  %v1343_v5 = vsel %vm170_vm0, %v1320_v61, 0.0  ;;  %v1323_v35 = vmul.f32 %v3753_v50, %v3753_v50  ;;  %v1324_v39 = vmul.f32 %v3755_v21, %v3755_v21  ;;  %v1952_v61 = vld [vmem:[#allocation14 + $0x28] sm:$0xff] }
 0x356   :  { %v1345_v37 = vsel %vm170_vm0, %v1321_v1, 0.0  ;;  %v1347_v40 = vsel %vm170_vm0, %v1322_v4, 0.0  ;;  %v1325_v44 = vmul.f32 %v3757_v22, %v3757_v22  ;;  %v1326_v8 = vmul.f32 %v1310_v23, %v1310_v23  ;;  %v1953_v4 = vld [vmem:[#allocation14 + $0x30] sm:$0xff] }
 0x357   :  { %v1334_v54 = vadd.f32 %v1333_v53, %v1332_v51  ;;  %v1349_v45 = vsel %vm170_vm0, %v1323_v35, 0.0  ;;  %v1351_v9 = vsel %vm170_vm0, %v1324_v39, 0.0  ;;  %v1327_v62 = vmul.f32 %v3759_v24, %v3759_v24  ;;  %v3809_v51 = vld [vmem:[#allocation9] ss:$0 sm:$0xff] }
 0x358   :  { %v1353_v11 = vsel %vm170_vm0, %v1325_v44, 0.0  ;;  %v1355_v12 = vsel %vm170_vm0, %v1326_v8, 0.0  ;;  %v1960_v44 = vld [vmem:[#allocation14 + $0x68] sm:$0xff] }
 0x359   :  { %v1336_v57 = vadd.f32 %v1335_v56, %v1334_v54  ;;  %v1357_v13 = vsel %vm170_vm0, %v1327_v62, 0.0  ;;  %v3820_v56 = vld [vmem:[#allocation11] ss:$0 sm:$0xff] }
 0x35b   :  { %v1338_v60 = vadd.f32 %v1337_v59, %v1336_v57 }
 0x35d   :  { %v1340_v0 = vadd.f32 %v1339_v63, %v1338_v60  ;;  %v1949_v60 = vld [vmem:[#allocation14 + $0x10] sm:$0xff]  ;;  %v1954_v63 = vld [vmem:[#allocation14 + $0x38] sm:$0xff] }
 0x35f   :  { %v1342_v3 = vadd.f32 %v1341_v2, %v1340_v0 }
 0x361   :  { %v1344_v6 = vadd.f32 %v1343_v5, %v1342_v3  ;;  %v1951_v3 = vld [vmem:[#allocation14 + $0x20] sm:$0xff]  ;;  %v1958_v5 = vld [vmem:[#allocation14 + $0x58] sm:$0xff] }
 0x363   :  { %v1346_v38 = vadd.f32 %v1345_v37, %v1344_v6  ;;  %v2959_v6 = vpack.c.bf16 %v1953_v4, %v1951_v3 }
 0x365   :  { %v1348_v42 = vadd.f32 %v1347_v40, %v1346_v38  ;;  %v1955_v40 = vld [vmem:[#allocation14 + $0x40] sm:$0xff] }
 0x367   :  { %v1350_v7 = vadd.f32 %v1349_v45, %v1348_v42  ;;  %v1957_v42 = vld [vmem:[#allocation14 + $0x50] sm:$0xff]  ;;  %v1962_v45 = vld [vmem:[#allocation14 + $0x78] sm:$0xff] }
 0x368   :  { %v2965_v62 = vpack.c.bf16 %v1962_v45, %v1960_v44  ;;  %v3036_v44 = vld [vmem:[#allocation3 + $0x48] sm:$0xff]  ;;  %v3037_v45 = vld [vmem:[#allocation3 + $0x50] sm:$0xff] }
 0x369   :  { %v1352_v10 = vadd.f32 %v1351_v9, %v1350_v7  ;;  %v2963_v7 = vpack.c.bf16 %v1957_v42, %v1955_v40  ;;  %v3034_v40 = vld [vmem:[#allocation3 + $0x38] sm:$0xff]  ;;  %v3035_v42 = vld [vmem:[#allocation3 + $0x40] sm:$0xff] }
 0x36b   :  { %v1354_v47 = vadd.f32 %v1353_v11, %v1352_v10  ;;  %v1959_v11 = vld [vmem:[#allocation14 + $0x60] sm:$0xff] }
 0x36d   :  { %v1356_v36 = vadd.f32 %v1355_v12, %v1354_v47  ;;  %v1961_v47 = vld [vmem:[#allocation14 + $0x70] sm:$0xff] }
 0x36e   :  { %v2967_v12 = vpack.c.bf16 %v1961_v47, %v1959_v11 }
 0x36f   :  { %v1358_v48 = vadd.f32 %v1357_v13, %v1356_v36 }
 0x371   :  { %v1359_v25 = vrot.slane %v1358_v48, 4 }
 0x373   :  { %v1360_v26 = vadd.f32 %v1359_v25, %v1358_v48 }
 0x375   :  { %v1361_v27 = vrot.slane %v1360_v26, 2 }
 0x377   :  { %v1362_v28 = vadd.f32 %v1361_v27, %v1360_v26 }
 0x379   :  { %v1363_v29 = vrot.slane %v1362_v28, 1 }
 0x37b   :  { %v1364_v30 = vadd.f32 %v1363_v29, %v1362_v28 }
 0x37d   :  { %v1365_v31 = vmul.f32 0.0078125, %v1364_v30 }
 0x37f   :  { %v1366_v32 = vadd.f32 1e-05, %v1365_v31 }
 0x381   :  { %3017 = vrsqrt.f32 %v1366_v32 }
 0x38b   :  { %v3807_v33 = vpop.eup %3017 }
 0x38c   :  { %v3812_v52 = vmul.f32 %v3807_v33, %v1310_v23  ;;  %v1368_v53 = vmul.f32 %v3807_v33, %v3731_v14  ;;  %v1369_v54 = vmul.f32 %v3807_v33, %v3733_v34  ;;  %v1370_v55 = vmul.f32 %v3807_v33, %v3735_v15  ;;  %v1947_v34 = vld [vmem:[#allocation14] sm:$0xff] }
 0x38d   :  { %v1371_v57 = vmul.f32 %v3807_v33, %v3737_v46  ;;  %v1372_v58 = vmul.f32 %v3807_v33, %v3739_v16  ;;  %v1373_v23 = vmul.f32 %v3807_v33, %v3741_v43  ;;  %v1374_v14 = vmul.f32 %v3807_v33, %v3743_v17  ;;  %v1956_v17 = vld [vmem:[#allocation14 + $0x48] sm:$0xff] }
 0x38e   :  { %v1391_v59 = vmul.f32 %v3809_v51, %v1368_v53  ;;  %v1392_v15 = vmul.f32 %v3809_v51, %v1369_v54  ;;  %v2955_v46 = vpack.c.bf16 %v1949_v60, %v1947_v34  ;;  %v1393_v2 = vmul.f32 %v3809_v51, %v1370_v55 }
 0x38f   :  { %v2957_v43 = vpack.c.bf16 %v1954_v63, %v1952_v61  ;;  %v1394_v38 = vmul.f32 %v3809_v51, %v1371_v57  ;;  %v2961_v39 = vpack.c.bf16 %v1958_v5, %v1956_v17  ;;  %v1395_v10 = vmul.f32 %v3809_v51, %v1372_v58 }
 0x390   :  { %v1414_v0 = vadd.f32 %v3820_v56, %v1391_v59  ;;  %v1415_v16 = vadd.f32 %v3820_v56, %v1392_v15  ;;  %v1416_v37 = vadd.f32 %v3820_v56, %v1393_v2  ;;  %v1396_v48 = vmul.f32 %v3809_v51, %v1373_v23 }
 0x391   :  { %v1417_v9 = vadd.f32 %v3820_v56, %v1394_v38  ;;  %v1418_v13 = vadd.f32 %v3820_v56, %v1395_v10  ;;  %v1397_v27 = vmul.f32 %v3809_v51, %v1374_v14  ;;  %v1375_v28 = vmul.f32 %v3807_v33, %v3745_v49  ;;  %v3032_v38 = vld [vmem:[#allocation3 + $0x28] sm:$0xff]  ;;  %v3041_v10 = vld [vmem:[#allocation3 + $0x70] sm:$0xff] }
 0x392   :  { %v1430_v1 = vmax.f32 %v1414_v0, 0.0  ;;  %v1431_v35 = vmax.f32 %v1415_v16, 0.0  ;;  %v1432_v8 = vmax.f32 %v1416_v37, 0.0  ;;  %v1419_v26 = vadd.f32 %v3820_v56, %v1396_v48  ;;  %v3031_v37 = vld [vmem:[#allocation3 + $0x20] sm:$0xff] }
 0x393   :  { %v1433_v36 = vmax.f32 %v1417_v9, 0.0  ;;  %v1434_v25 = vmax.f32 %v1418_v13, 0.0  ;;  %v1420_v30 = vadd.f32 %v3820_v56, %v1397_v27  ;;  %v1398_v31 = vmul.f32 %v3809_v51, %v1375_v28  ;;  %v3040_v9 = vld [vmem:[#allocation3 + $0x68] sm:$0xff] }
 0x394   :  { %2585 = vmatmul.mubr.msk.f32.vlgmr.msra.gmra.mrb[0].mxu0 %vm170_vm0, %v1430_v1  ;;  %v1435_v29 = vmax.f32 %v1419_v26, 0.0  ;;  %v1376_v32 = vmul.f32 %v3807_v33, %v3747_v18  ;;  %v1377_v55 = vmul.f32 %v3807_v33, %v3749_v19  ;;  %v1378_v23 = vmul.f32 %v3807_v33, %v3751_v20 }
 0x395   :  { %2956 = vmatpush1.bf16.msra.mxu0 %v2955_v46  ;;  %1580 = vmatprep.mubr.f32.mxu0 %v3265_v41  ;;  %v1436_v53 = vmax.f32 %v1420_v30, 0.0  ;;  %v1421_v54 = vadd.f32 %v3820_v56, %v1398_v31  ;;  %v1379_v34 = vmul.f32 %v3807_v33, %v3753_v50  ;;  %v1380_v61 = vmul.f32 %v3807_v33, %v3755_v21 }
 0x396   :  { %2958 = vmatprep.subr.bf16.mxu0 %v2957_v43  ;;  %v1399_v49 = vmul.f32 %v3809_v51, %v1376_v32  ;;  %v1400_v18 = vmul.f32 %v3809_v51, %v1377_v55  ;;  %v1401_v19 = vmul.f32 %v3809_v51, %v1378_v23  ;;  %v1381_v46 = vmul.f32 %v3807_v33, %v3757_v22 }
 0x397   :  { %v1437_v57 = vmax.f32 %v1421_v54, 0.0  ;;  %v1402_v20 = vmul.f32 %v3809_v51, %v1379_v34  ;;  %v1403_v50 = vmul.f32 %v3809_v51, %v1380_v61  ;;  %v1405_v2 = vmul.f32 %v3809_v51, %v3812_v52 }
 0x398   :  { %2586 = vmatmul.mubr.msk.f32.gmra.mrb[2].mxu0 %vm170_vm0, %v1431_v35  ;;  %v1422_v58 = vadd.f32 %v3820_v56, %v1399_v49  ;;  %v1423_v59 = vadd.f32 %v3820_v56, %v1400_v18  ;;  %v1424_v15 = vadd.f32 %v3820_v56, %v1401_v19  ;;  %v1404_v21 = vmul.f32 %v3809_v51, %v1381_v46  ;;  %v3030_v35 = vld [vmem:[#allocation3 + $0x18] sm:$0xff] }
 0x399   :  { %1586 = vmatprep.mubr.f32.mxu0 %v3265_v41  ;;  %2960 = vmatpush1.bf16.msra.mxu0 %v2959_v6  ;;  %v1425_v0 = vadd.f32 %v3820_v56, %v1402_v20  ;;  %v1426_v16 = vadd.f32 %v3820_v56, %v1403_v50  ;;  %v1383_v22 = vmul.f32 %v3807_v33, %v3759_v24  ;;  %v3027_v33 = vld [vmem:[#allocation3] sm:$0xff] }
 0x39a   :  { %2962 = vmatprep.subr.bf16.mxu0 %v2961_v39  ;;  %v1438_v14 = vmax.f32 %v1422_v58, 0.0  ;;  %v1439_v60 = vmax.f32 %v1423_v59, 0.0  ;;  %v1440_v63 = vmax.f32 %v1424_v15, 0.0  ;;  %v1427_v3 = vadd.f32 %v3820_v56, %v1404_v21  ;;  %v3033_v39 = vld [vmem:[#allocation3 + $0x30] sm:$0xff] }
 0x39b   :  { %v1441_v1 = vmax.f32 %v1425_v0, 0.0  ;;  %v1442_v43 = vmax.f32 %v1426_v16, 0.0  ;;  %v1428_v4 = vadd.f32 %v3820_v56, %v1405_v2  ;;  %v1406_v5 = vmul.f32 %v3809_v51, %v1383_v22  ;;  %v3028_v51 = vld [vmem:[#allocation3 + $0x8] sm:$0xff] }
 0x39c   :  { %2587 = vmatmul.mubr.msk.f32.gmra.mrb[4].mxu0 %vm170_vm0, %v1432_v8  ;;  %v1443_v17 = vmax.f32 %v1427_v3, 0.0  ;;  %v3039_v8 = vld [vmem:[#allocation3 + $0x60] sm:$0xff] }
 0x39d   :  { %1592 = vmatprep.mubr.f32.mxu0 %v3265_v41  ;;  %2964 = vmatpush1.bf16.msra.mxu0 %v2963_v7  ;;  %v1444_v52 = vmax.f32 %v1428_v4, 0.0  ;;  %v1429_v6 = vadd.f32 %v3820_v56, %v1406_v5  ;;  %v3029_v56 = vld [vmem:[#allocation3 + $0x10] sm:$0xff]  ;;  %v3038_v7 = vld [vmem:[#allocation3 + $0x58] sm:$0xff] }
 0x39e   :  { %2966 = vmatprep.subr.bf16.mxu0 %v2965_v62  ;;  %v3042_v62 = vld [vmem:[#allocation3 + $0x78] sm:$0xff] }
 0x39f   :  { %v1445_v24 = vmax.f32 %v1429_v6, 0.0 }
 0x3a0   :  { %2588 = vmatmul.mubr.msk.f32.gmra.mrb[6].mxu0 %vm170_vm0, %v1433_v36 }
 0x3a1   :  { %1598 = vmatprep.mubr.f32.mxu0 %v3265_v41  ;;  %2968 = vmatpush1.bf16.msra.mxu0 %v2967_v12 }
 0x3a4   :  { %2589 = vmatmul.mubr.msk.f32.gmra.mrb[8].mxu0 %vm170_vm0, %v1434_v25 }
 0x3a5   :  { %1604 = vmatprep.mubr.f32.mxu0 %v3265_v41 }
 0x3a8   :  { %2590 = vmatmul.mubr.msk.f32.gmra.mrb[10].mxu0 %vm170_vm0, %v1435_v29 }
 0x3a9   :  { %1610 = vmatprep.mubr.f32.mxu0 %v3265_v41 }
 0x3ac   :  { %2591 = vmatmul.mubr.msk.f32.gmra.mrb[12].mxu0 %vm170_vm0, %v1436_v53 }
 0x3ad   :  { %1616 = vmatprep.mubr.f32.mxu0 %v3265_v41 }
 0x3b0   :  { %2592 = vmatmul.mubr.msk.f32.gmra.mrb[14].mxu0 %vm170_vm0, %v1437_v57 }
 0x3b1   :  { %1622 = vmatprep.mubr.f32.mxu0 %v3265_v41 }
 0x3b4   :  { %2593 = vmatmul.mubr.msk.f32.gmra.mrb[16].mxu0 %vm170_vm0, %v1438_v14 }
 0x3b5   :  { %1628 = vmatprep.mubr.f32.mxu0 %v3265_v41 }
 0x3b8   :  { %2594 = vmatmul.mubr.msk.f32.gmra.mrb[18].mxu0 %vm170_vm0, %v1439_v60 }
 0x3b9   :  { %1634 = vmatprep.mubr.f32.mxu0 %v3265_v41 }
 0x3bc   :  { %2595 = vmatmul.mubr.msk.f32.gmra.mrb[20].mxu0 %vm170_vm0, %v1440_v63 }
 0x3bd   :  { %1640 = vmatprep.mubr.f32.mxu0 %v3265_v41 }
 0x3c0   :  { %2596 = vmatmul.mubr.msk.f32.gmra.mrb[22].mxu0 %vm170_vm0, %v1441_v1 }
 0x3c1   :  { %1646 = vmatprep.mubr.f32.mxu0 %v3265_v41 }
 0x3c4   :  { %2597 = vmatmul.mubr.msk.f32.gmra.mrb[24].mxu0 %vm170_vm0, %v1442_v43 }
 0x3c5   :  { %1652 = vmatprep.mubr.f32.mxu0 %v3265_v41 }
 0x3c8   :  { %2598 = vmatmul.mubr.msk.f32.gmra.mrb[26].mxu0 %vm170_vm0, %v1443_v17 }
 0x3c9   :  { %1658 = vmatprep.mubr.f32.mxu0 %v3265_v41 }
 0x3cc   :  { %2599 = vmatmul.mubr.msk.f32.gmra.mrb[28].mxu0 %vm170_vm0, %v1444_v52 }
 0x3cd   :  { %1664 = vmatprep.mubr.f32.mxu0 %v3265_v41 }
 0x3d0   :  { %2600 = vmatmul.mubr.msk.f32.gmra.mrb[30].mxu0 %vm170_vm0, %v1445_v24 }
 0x3d1   :  { %2027 = vmatprep.mubr.f32.mxu0 %v3265_v41 }
 0x3d4   :  { %2601 = vmatmul.mubr.msk.f32.vlgmr.msra.gmra.mrb[32].mxu0 %vm170_vm0, %v3027_v33 }
 0x3d5   :  { %2033 = vmatprep.mubr.f32.mxu0 %v3265_v41 }
 0x3d8   :  { %2602 = vmatmul.mubr.msk.f32.gmra.mrb[34].mxu0 %vm170_vm0, %v3028_v51 }
 0x3d9   :  { %2039 = vmatprep.mubr.f32.mxu0 %v3265_v41 }
 0x3dc   :  { %2603 = vmatmul.mubr.msk.f32.gmra.mrb[36].mxu0 %vm170_vm0, %v3029_v56 }
 0x3dd   :  { %2045 = vmatprep.mubr.f32.mxu0 %v3265_v41 }
 0x3e0   :  { %2604 = vmatmul.mubr.msk.f32.gmra.mrb[38].mxu0 %vm170_vm0, %v3030_v35 }
 0x3e1   :  { %2051 = vmatprep.mubr.f32.mxu0 %v3265_v41 }
 0x3e4   :  { %2605 = vmatmul.mubr.msk.f32.gmra.mrb[40].mxu0 %vm170_vm0, %v3031_v37 }
 0x3e5   :  { %2057 = vmatprep.mubr.f32.mxu0 %v3265_v41 }
 0x3e8   :  { %2606 = vmatmul.mubr.msk.f32.gmra.mrb[42].mxu0 %vm170_vm0, %v3032_v38 }
 0x3e9   :  { %2063 = vmatprep.mubr.f32.mxu0 %v3265_v41 }
 0x3ec   :  { %2607 = vmatmul.mubr.msk.f32.gmra.mrb[44].mxu0 %vm170_vm0, %v3033_v39 }
 0x3ed   :  { %2069 = vmatprep.mubr.f32.mxu0 %v3265_v41 }
 0x3f0   :  { %2608 = vmatmul.mubr.msk.f32.gmra.mrb[46].mxu0 %vm170_vm0, %v3034_v40 }
 0x3f1   :  { %2075 = vmatprep.mubr.f32.mxu0 %v3265_v41 }
 0x3f4   :  { %2609 = vmatmul.mubr.msk.f32.gmra.mrb[48].mxu0 %vm170_vm0, %v3035_v42 }
 0x3f5   :  { %2081 = vmatprep.mubr.f32.mxu0 %v3265_v41 }
 0x3f8   :  { %2610 = vmatmul.mubr.msk.f32.gmra.mrb[50].mxu0 %vm170_vm0, %v3036_v44 }
 0x3f9   :  { %2087 = vmatprep.mubr.f32.mxu0 %v3265_v41 }
 0x3fc   :  { %2611 = vmatmul.mubr.msk.f32.gmra.mrb[52].mxu0 %vm170_vm0, %v3037_v45 }
 0x3fd   :  { %2093 = vmatprep.mubr.f32.mxu0 %v3265_v41 }
 0x400   :  { %2612 = vmatmul.mubr.msk.f32.gmra.mrb[54].mxu0 %vm170_vm0, %v3038_v7 }
 0x401   :  { %2099 = vmatprep.mubr.f32.mxu0 %v3265_v41 }
 0x404   :  { %2613 = vmatmul.mubr.msk.f32.gmra.mrb[56].mxu0 %vm170_vm0, %v3039_v8 }
 0x405   :  { %2105 = vmatprep.mubr.f32.mxu0 %v3265_v41 }
 0x408   :  { %2614 = vmatmul.mubr.msk.f32.gmra.mrb[58].mxu0 %vm170_vm0, %v3040_v9 }
 0x409   :  { %2111 = vmatprep.mubr.f32.mxu0 %v3265_v41 }
 0x40c   :  { %2615 = vmatmul.mubr.msk.f32.gmra.mrb[60].mxu0 %vm170_vm0, %v3041_v10 }
 0x40d   :  { %2117 = vmatprep.mubr.f32.mxu0 %v3265_v41 }
 0x410   :  { %2616 = vmatmul.mubr.msk.f32.gmra.mrb[62].mxu0 %vm170_vm0, %v3042_v62 }
 0x467   :  { %v3942_v11 = vpop.f32.mrb[0].mxu0 }
 0x468   :  { %v3944_v47 = vpop.f32.mrb[1].mxu0 }
 0x46b   :  { %v3946_v12 = vpop.f32.mrb[2].mxu0 }
 0x46c   :  { %v1671_v36 = vadd.f32 %v3946_v12, %v3942_v11  ;;  %v3950_v13 = vpop.f32.mrb[3].mxu0 }
 0x46d   :  { %v1692_v48 = vadd.f32 %v3950_v13, %v3944_v47 }
 0x46f   :  { %v3954_v25 = vpop.f32.mrb[4].mxu0 }
 0x470   :  { %v1672_v41 = vadd.f32 %v1671_v36, %v3954_v25  ;;  %v3957_v26 = vpop.f32.mrb[5].mxu0 }
 0x471   :  { %v1693_v27 = vadd.f32 %v1692_v48, %v3957_v26 }
 0x473   :  { %v3960_v28 = vpop.f32.mrb[6].mxu0 }
 0x474   :  { %v1673_v29 = vadd.f32 %v1672_v41, %v3960_v28  ;;  %v3963_v30 = vpop.f32.mrb[7].mxu0 }
 0x475   :  { %v1694_v31 = vadd.f32 %v1693_v27, %v3963_v30 }
 0x477   :  { %v3966_v32 = vpop.f32.mrb[8].mxu0 }
 0x478   :  { %v1674_v53 = vadd.f32 %v1673_v29, %v3966_v32  ;;  %v3969_v54 = vpop.f32.mrb[9].mxu0 }
 0x479   :  { %v1695_v49 = vadd.f32 %v1694_v31, %v3969_v54 }
 0x47b   :  { %v3972_v55 = vpop.f32.mrb[10].mxu0 }
 0x47c   :  { %v1675_v57 = vadd.f32 %v1674_v53, %v3972_v55  ;;  %v3975_v58 = vpop.f32.mrb[11].mxu0 }
 0x47d   :  { %v1696_v18 = vadd.f32 %v1695_v49, %v3975_v58 }
 0x47f   :  { %v3978_v23 = vpop.f32.mrb[12].mxu0 }
 0x480   :  { %v1676_v14 = vadd.f32 %v1675_v57, %v3978_v23  ;;  %v3981_v59 = vpop.f32.mrb[13].mxu0 }
 0x481   :  { %v1697_v19 = vadd.f32 %v1696_v18, %v3981_v59 }
 0x483   :  { %v3984_v34 = vpop.f32.mrb[14].mxu0 }
 0x484   :  { %v1677_v60 = vadd.f32 %v1676_v14, %v3984_v34  ;;  %v3987_v15 = vpop.f32.mrb[15].mxu0 }
 0x485   :  { %v1698_v20 = vadd.f32 %v1697_v19, %v3987_v15 }
 0x487   :  { %v3990_v61 = vpop.f32.mrb[16].mxu0 }
 0x488   :  { %v1678_v63 = vadd.f32 %v1677_v60, %v3990_v61  ;;  %v3993_v0 = vpop.f32.mrb[17].mxu0 }
 0x489   :  { %v1699_v50 = vadd.f32 %v1698_v20, %v3993_v0 }
 0x48b   :  { %v1630_v46 = vpop.f32.mrb[18].mxu0 }
 0x48c   :  { %v1679_v1 = vadd.f32 %v1678_v63, %v1630_v46  ;;  %v3996_v16 = vpop.f32.mrb[19].mxu0 }
 0x48d   :  { %v1700_v21 = vadd.f32 %v1699_v50, %v3996_v16 }
 0x48f   :  { %v1636_v2 = vpop.f32.mrb[20].mxu0 }
 0x490   :  { %v1680_v43 = vadd.f32 %v1679_v1, %v1636_v2  ;;  %v3999_v3 = vpop.f32.mrb[21].mxu0 }
 0x491   :  { %v1701_v22 = vadd.f32 %v1700_v21, %v3999_v3 }
 0x493   :  { %v1642_v4 = vpop.f32.mrb[22].mxu0 }
 0x494   :  { %v1681_v17 = vadd.f32 %v1680_v43, %v1642_v4  ;;  %v4002_v5 = vpop.f32.mrb[23].mxu0 }
 0x495   :  { %v1702_v52 = vadd.f32 %v1701_v22, %v4002_v5 }
 0x497   :  { %v1648_v6 = vpop.f32.mrb[24].mxu0 }
 0x498   :  { %v1682_v24 = vadd.f32 %v1681_v17, %v1648_v6  ;;  %v4005_v33 = vpop.f32.mrb[25].mxu0 }
 0x499   :  { %v1703_v51 = vadd.f32 %v1702_v52, %v4005_v33 }
 0x49b   :  { %v1654_v56 = vpop.f32.mrb[26].mxu0 }
 0x49c   :  { %v1683_v35 = vadd.f32 %v1682_v24, %v1654_v56  ;;  %v4008_v37 = vpop.f32.mrb[27].mxu0 }
 0x49d   :  { %v1704_v38 = vadd.f32 %v1703_v51, %v4008_v37 }
 0x49f   :  { %v1660_v39 = vpop.f32.mrb[28].mxu0 }
 0x4a0   :  { %v1684_v40 = vadd.f32 %v1683_v35, %v1660_v39  ;;  %v4011_v42 = vpop.f32.mrb[29].mxu0 }
 0x4a1   :  { %v1705_v44 = vadd.f32 %v1704_v38, %v4011_v42 }
 0x4a3   :  { %v1666_v45 = vpop.f32.mrb[30].mxu0 }
 0x4a4   :  { %v1685_v7 = vadd.f32 %v1684_v40, %v1666_v45  ;;  %v4014_v8 = vpop.f32.mrb[31].mxu0 }
 0x4a5   :  { %v1706_v9 = vadd.f32 %v1705_v44, %v4014_v8 }
 0x4a6   :  { %v1686_v10 = vrot.slane %v1685_v7, 4 }
 0x4a7   :  { %v1707_v62 = vrot.slane %v1706_v9, 4  ;;  %v4017_v36 = vpop.f32.mrb[32].mxu0 }
 0x4a8   :  { %v1687_v48 = vadd.f32 %v1686_v10, %v1685_v7  ;;  %v4019_v41 = vpop.f32.mrb[33].mxu0 }
 0x4a9   :  { %4892 = vst [vmem:[#allocation24_spill] sm:$0xff] %v4019_v41  ;;  %v1708_v27 = vadd.f32 %v1707_v62, %v1706_v9 }
 0x4aa   :  { %v1688_v29 = vrot.slane %v1687_v48, 2 }
 0x4ab   :  { %v1709_v31 = vrot.slane %v1708_v27, 2  ;;  %v4021_v53 = vpop.f32.mrb[34].mxu0 }
 0x4ac   :  { %v1689_v49 = vadd.f32 %v1688_v29, %v1687_v48  ;;  %v2124_v57 = vadd.f32 %v4021_v53, %v4017_v36  ;;  %v4025_v18 = vpop.f32.mrb[35].mxu0 }
 0x4ad   :  { %4893 = vst [vmem:[#allocation25_spill] sm:$0xff] %v4025_v18  ;;  %v1710_v14 = vadd.f32 %v1709_v31, %v1708_v27  ;;  %v2145_v19 = vadd.f32 %v4025_v18, %v4019_v41 }
 0x4ae   :  { %v1690_v60 = vrot.slane %v1689_v49, 1 }
 0x4af   :  { %v1711_v20 = vrot.slane %v1710_v14, 1  ;;  %v4029_v63 = vpop.f32.mrb[36].mxu0 }
 0x4b0   :  { %v1691_v50 = vadd.f32 %v1690_v60, %v1689_v49  ;;  %v4032_v1 = vadd.f32 %v2124_v57, %v4029_v63  ;;  %v4034_v21 = vpop.f32.mrb[37].mxu0 }
 0x4b1   :  { %4894 = vst [vmem:[#allocation26_spill] sm:$0xff] %v4034_v21  ;;  %v4037_v43 = vadd.f32 %v2145_v19, %v4034_v21  ;;  %v1712_v17 = vadd.f32 %v1711_v20, %v1710_v14 }
 0x4b2   :  { %v1713_v22 = vmul.f32 0.0078125, %v1691_v50 }
 0x4b3   :  { %v4039_v52 = vpop.f32.mrb[38].mxu0 }
 0x4b4   :  { %v4042_v24 = vsub.f32 %v3942_v11, %v1713_v22  ;;  %v4045_v51 = vsub.f32 %v3946_v12, %v1713_v22  ;;  %v4048_v35 = vsub.f32 %v3954_v25, %v1713_v22  ;;  %v4051_v38 = vsub.f32 %v3960_v28, %v1713_v22  ;;  %v4053_v40 = vpop.f32.mrb[39].mxu0 }
 0x4b5   :  { %4895 = vst [vmem:[#allocation27_spill] sm:$0xff] %v4053_v40  ;;  %v4056_v44 = vsub.f32 %v3966_v32, %v1713_v22  ;;  %v4059_v7 = vsub.f32 %v3972_v55, %v1713_v22  ;;  %v4062_v11 = vsub.f32 %v3978_v23, %v1713_v22  ;;  %v4065_v12 = vsub.f32 %v3984_v34, %v1713_v22 }
 0x4b6   :  { %v4068_v25 = vsub.f32 %v3990_v61, %v1713_v22  ;;  %v4070_v9 = vsub.f32 %v1630_v46, %v1713_v22  ;;  %v4072_v28 = vsub.f32 %v1636_v2, %v1713_v22  ;;  %v4074_v10 = vsub.f32 %v1642_v4, %v1713_v22 }
 0x4b7   :  { %v4076_v32 = vsub.f32 %v1648_v6, %v1713_v22  ;;  %v4078_v62 = vsub.f32 %v1654_v56, %v1713_v22  ;;  %v4080_v55 = vsub.f32 %v1660_v39, %v1713_v22  ;;  %v4082_v23 = vsub.f32 %v1666_v45, %v1713_v22  ;;  %v4084_v48 = vpop.f32.mrb[40].mxu0 }
 0x4b8   :  { %v1747_v34 = vmul.f32 %v4042_v24, %v4042_v24  ;;  %v1749_v61 = vmul.f32 %v4045_v51, %v4045_v51  ;;  %v1714_v46 = vmul.f32 0.0078125, %v1712_v17  ;;  %v4090_v2 = vpop.f32.mrb[41].mxu0  ;;  %v1751_v4 = vmul.f32 %v4048_v35, %v4048_v35 }
 0x4b9   :  { %4896 = vst [vmem:[#allocation28_spill] sm:$0xff] %v4090_v2  ;;  %v1753_v6 = vmul.f32 %v4051_v38, %v4051_v38  ;;  %v1757_v50 = vmul.f32 %v4059_v7, %v4059_v7 }
 0x4ba   :  { %v1779_v39 = vadd.f32 %v1749_v61, %v1747_v34  ;;  %v4099_v45 = vsub.f32 %v3944_v47, %v1714_v46  ;;  %v4102_v27 = vsub.f32 %v3950_v13, %v1714_v46  ;;  %v4105_v29 = vsub.f32 %v3957_v26, %v1714_v46 }
 0x4bb   :  { %v4096_v56 = vpop.f32.mrb[42].mxu0  ;;  %v4110_v49 = vsub.f32 %v3963_v30, %v1714_v46  ;;  %v4113_v57 = vsub.f32 %v3969_v54, %v1714_v46  ;;  %v4116_v14 = vsub.f32 %v3975_v58, %v1714_v46  ;;  %v4119_v47 = vsub.f32 %v3981_v59, %v1714_v46 }
 0x4bc   :  { %v4107_v31 = vpop.f32.mrb[43].mxu0  ;;  %v1780_v19 = vadd.f32 %v1779_v39, %v1751_v4  ;;  %v4122_v13 = vsub.f32 %v3987_v15, %v1714_v46  ;;  %v4125_v26 = vsub.f32 %v3993_v0, %v1714_v46  ;;  %v4128_v60 = vsub.f32 %v3996_v16, %v1714_v46 }
 0x4bd   :  { %4897 = vst [vmem:[#allocation29_spill] sm:$0xff] %v4107_v31  ;;  %v4131_v30 = vsub.f32 %v3999_v3, %v1714_v46  ;;  %v4134_v54 = vsub.f32 %v4002_v5, %v1714_v46  ;;  %v4137_v58 = vsub.f32 %v4005_v33, %v1714_v46  ;;  %v4140_v59 = vsub.f32 %v4008_v37, %v1714_v46 }
 0x4be   :  { %v1755_v0 = vmul.f32 %v4056_v44, %v4056_v44  ;;  %v1781_v20 = vadd.f32 %v1780_v19, %v1753_v6  ;;  %v4147_v16 = vsub.f32 %v4011_v42, %v1714_v46  ;;  %v4150_v3 = vsub.f32 %v4014_v8, %v1714_v46 }
 0x4bf   :  { %v4142_v15 = vpop.f32.mrb[44].mxu0  ;;  %v1748_v33 = vmul.f32 %v4099_v45, %v4099_v45  ;;  %v1750_v37 = vmul.f32 %v4102_v27, %v4102_v27  ;;  %v1759_v42 = vmul.f32 %v4062_v11, %v4062_v11  ;;  %v1752_v61 = vmul.f32 %v4105_v29, %v4105_v29 }
 0x4c0   :  { %v4152_v5 = vpop.f32.mrb[45].mxu0  ;;  %v1782_v22 = vadd.f32 %v1781_v20, %v1755_v0  ;;  %v2126_v4 = vadd.f32 %v4032_v1, %v4039_v52  ;;  %v2147_v6 = vadd.f32 %v4037_v43, %v4053_v40  ;;  %v1761_v39 = vmul.f32 %v4065_v12, %v4065_v12 }
 0x4c1   :  { %4898 = vst [vmem:[#allocation30_spill] sm:$0xff] %v4152_v5  ;;  %v1800_v46 = vadd.f32 %v1750_v37, %v1748_v33  ;;  %v1754_v0 = vmul.f32 %v4110_v49, %v4110_v49  ;;  %v1763_v1 = vmul.f32 %v4068_v25, %v4068_v25  ;;  %v1756_v43 = vmul.f32 %v4113_v57, %v4113_v57 }
 0x4c2   :  { %v1783_v34 = vadd.f32 %v1782_v22, %v1757_v50  ;;  %v2127_v50 = vadd.f32 %v2126_v4, %v4084_v48  ;;  %v2148_v22 = vadd.f32 %v2147_v6, %v4090_v2  ;;  %v1758_v6 = vmul.f32 %v4116_v14, %v4116_v14 }
 0x4c3   :  { %v4160_v17 = vpop.f32.mrb[46].mxu0  ;;  %v1801_v20 = vadd.f32 %v1800_v46, %v1752_v61  ;;  %v1765_v46 = vmul.f32 %v4070_v9, %v4070_v9 }
 0x4c4   :  { %v4164_v8 = vpop.f32.mrb[47].mxu0  ;;  %v1784_v19 = vadd.f32 %v1783_v34, %v1759_v42  ;;  %v2128_v34 = vadd.f32 %v2127_v50, %v4096_v56  ;;  %v2149_v61 = vadd.f32 %v2148_v22, %v4107_v31  ;;  %v1760_v22 = vmul.f32 %v4119_v47, %v4119_v47 }
 0x4c5   :  { %4899 = vst [vmem:[#allocation31_spill] sm:$0xff] %v4164_v8  ;;  %v1802_v42 = vadd.f32 %v1801_v20, %v1754_v0  ;;  %v1767_v0 = vmul.f32 %v4072_v28, %v4072_v28 }
 0x4c6   :  { %v1785_v33 = vadd.f32 %v1784_v19, %v1761_v39  ;;  %v2129_v39 = vadd.f32 %v2128_v34, %v4142_v15  ;;  %v2150_v19 = vadd.f32 %v2149_v61, %v4152_v5  ;;  %v1762_v61 = vmul.f32 %v4122_v13, %v4122_v13 }
 0x4c7   :  { %v4178_v21 = vpop.f32.mrb[48].mxu0  ;;  %v1803_v2 = vadd.f32 %v1802_v42, %v1756_v43  ;;  %v1769_v42 = vmul.f32 %v4074_v10, %v4074_v10 }
 0x4c8   :  { %4900 = vst [vmem:[#allocation32_spill] sm:$0xff] %v4178_v21  ;;  %v4182_v37 = vpop.f32.mrb[49].mxu0  ;;  %v1786_v4 = vadd.f32 %v1785_v33, %v1763_v1  ;;  %v2130_v33 = vadd.f32 %v2129_v39, %v4160_v17  ;;  %v2151_v43 = vadd.f32 %v2150_v19, %v4164_v8  ;;  %v1764_v19 = vmul.f32 %v4125_v26, %v4125_v26 }
 0x4c9   :  { %4901 = vst [vmem:[#allocation33_spill] sm:$0xff] %v4182_v37  ;;  %v1804_v1 = vadd.f32 %v1803_v2, %v1758_v6  ;;  %v1771_v2 = vmul.f32 %v4076_v32, %v4076_v32 }
 0x4ca   :  { %v1787_v20 = vadd.f32 %v1786_v4, %v1765_v46  ;;  %v2131_v46 = vadd.f32 %v2130_v33, %v4178_v21  ;;  %v2152_v4 = vadd.f32 %v2151_v43, %v4182_v37  ;;  %v1766_v43 = vmul.f32 %v4128_v60, %v4128_v60 }
 0x4cb   :  { %v4194_v40 = vpop.f32.mrb[50].mxu0  ;;  %v1805_v5 = vadd.f32 %v1804_v1, %v1760_v22  ;;  %v1773_v1 = vmul.f32 %v4078_v62, %v4078_v62 }
 0x4cc   :  { %4902 = vst [vmem:[#allocation34_spill] sm:$0xff] %v4194_v40  ;;  %v4198_v50 = vpop.f32.mrb[51].mxu0  ;;  %v1788_v34 = vadd.f32 %v1787_v20, %v1767_v0  ;;  %v2132_v20 = vadd.f32 %v2131_v46, %v4194_v40 }
 0x4cd   :  { %4903 = vst [vmem:[#allocation35_spill] sm:$0xff] %v4198_v50  ;;  %v1806_v0 = vadd.f32 %v1805_v5, %v1762_v61  ;;  %v2153_v22 = vadd.f32 %v2152_v4, %v4198_v50  ;;  %v1775_v5 = vmul.f32 %v4080_v55, %v4080_v55  ;;  %v1768_v4 = vmul.f32 %v4131_v30, %v4131_v30 }
 0x4ce   :  { %v1789_v6 = vadd.f32 %v1788_v34, %v1769_v42 }
 0x4cf   :  { %v4210_v31 = vpop.f32.mrb[52].mxu0  ;;  %v1807_v37 = vadd.f32 %v1806_v0, %v1764_v19  ;;  %v1777_v0 = vmul.f32 %v4082_v23, %v4082_v23 }
 0x4d0   :  { %4904 = vst [vmem:[#allocation36_spill] sm:$0xff] %v4210_v31  ;;  %v4214_v39 = vpop.f32.mrb[53].mxu0  ;;  %v1790_v33 = vadd.f32 %v1789_v6, %v1771_v2  ;;  %v2133_v42 = vadd.f32 %v2132_v20, %v4210_v31 }
 0x4d1   :  { %4905 = vst [vmem:[#allocation37_spill] sm:$0xff] %v4214_v39  ;;  %v2154_v34 = vadd.f32 %v2153_v22, %v4214_v39  ;;  %v1808_v2 = vadd.f32 %v1807_v37, %v1766_v43  ;;  %v1770_v22 = vmul.f32 %v4134_v54, %v4134_v54  ;;  %v1772_v37 = vmul.f32 %v4137_v58, %v4137_v58 }
 0x4d2   :  { %v1791_v61 = vadd.f32 %v1790_v33, %v1773_v1 }
 0x4d3   :  { %v4226_v8 = vpop.f32.mrb[54].mxu0  ;;  %v1809_v39 = vadd.f32 %v1808_v2, %v1768_v4 }
 0x4d4   :  { %4906 = vst [vmem:[#allocation38_spill] sm:$0xff] %v4226_v8  ;;  %v4230_v46 = vpop.f32.mrb[55].mxu0  ;;  %v2134_v6 = vadd.f32 %v2133_v42, %v4226_v8  ;;  %v1792_v20 = vadd.f32 %v1791_v61, %v1775_v5  ;;  %v1774_v5 = vmul.f32 %v4140_v59, %v4140_v59 }
 0x4d5   :  { %4907 = vst [vmem:[#allocation39_spill] sm:$0xff] %v4230_v46  ;;  %v2155_v19 = vadd.f32 %v2154_v34, %v4230_v46  ;;  %v1810_v43 = vadd.f32 %v1809_v39, %v1770_v22 }
 0x4d6   :  { %v1793_v1 = vadd.f32 %v1792_v20, %v1777_v0 }
 0x4d7   :  { %v4240_v50 = vpop.f32.mrb[56].mxu0  ;;  %v1811_v61 = vadd.f32 %v1810_v43, %v1772_v37 }
 0x4d8   :  { %4908 = vst [vmem:[#allocation40_spill] sm:$0xff] %v4240_v50  ;;  %v2135_v33 = vadd.f32 %v2134_v6, %v4240_v50  ;;  %v4243_v18 = vpop.f32.mrb[57].mxu0  ;;  %v1794_v34 = vrot.slane %v1793_v1, 4  ;;  %v1776_v6 = vmul.f32 %v4147_v16, %v4147_v16 }
 0x4d9   :  { %4909 = vst [vmem:[#allocation41_spill] sm:$0xff] %v4243_v18  ;;  %v2156_v42 = vadd.f32 %v2155_v19, %v4243_v18  ;;  %v1812_v20 = vadd.f32 %v1811_v61, %v1774_v5  ;;  %v1778_v19 = vmul.f32 %v4150_v3, %v4150_v3 }
 0x4da   :  { %v1795_v4 = vadd.f32 %v1794_v34, %v1793_v1 }
 0x4db   :  { %v4250_v46 = vpop.f32.mrb[58].mxu0  ;;  %v1813_v18 = vadd.f32 %v1812_v20, %v1776_v6 }
 0x4dc   :  { %4910 = vst [vmem:[#allocation42_spill] sm:$0xff] %v4250_v46  ;;  %v2136_v2 = vadd.f32 %v2135_v33, %v4250_v46  ;;  %v4253_v0 = vpop.f32.mrb[59].mxu0  ;;  %v1796_v22 = vrot.slane %v1795_v4, 2 }
 0x4dd   :  { %4911 = vst [vmem:[#allocation43_spill] sm:$0xff] %v4253_v0  ;;  %v2157_v39 = vadd.f32 %v2156_v42, %v4253_v0  ;;  %v1814_v33 = vadd.f32 %v1813_v18, %v1778_v19 }
 0x4de   :  { %v1797_v37 = vadd.f32 %v1796_v22, %v1795_v4 }
 0x4df   :  { %v4260_v41 = vpop.f32.mrb[60].mxu0  ;;  %v1815_v50 = vrot.slane %v1814_v33, 4 }
 0x4e0   :  { %4912 = vst [vmem:[#allocation44_spill] sm:$0xff] %v4260_v41  ;;  %v2137_v1 = vadd.f32 %v2136_v2, %v4260_v41  ;;  %v4263_v43 = vpop.f32.mrb[61].mxu0  ;;  %v1798_v46 = vrot.slane %v1797_v37, 1 }
 0x4e1   :  { %4913 = vst [vmem:[#allocation45_spill] sm:$0xff] %v4263_v43  ;;  %v2158_v34 = vadd.f32 %v2157_v39, %v4263_v43  ;;  %v1816_v6 = vadd.f32 %v1815_v50, %v1814_v33 }
 0x4e2   :  { %v1799_v42 = vadd.f32 %v1798_v46, %v1797_v37 }
 0x4e3   :  { %v4266_v5 = vpop.f32.mrb[62].mxu0  ;;  %v1817_v2 = vrot.slane %v1816_v6, 2 }
 0x4e4   :  { %4914 = vst [vmem:[#allocation46_spill] sm:$0xff] %v4266_v5  ;;  %v2138_v61 = vadd.f32 %v2137_v1, %v4266_v5  ;;  %v4269_v0 = vpop.f32.mrb[63].mxu0  ;;  %v1821_v4 = vmul.f32 0.0078125, %v1799_v42 }
 0x4e5   :  { %v2159_v20 = vadd.f32 %v2158_v34, %v4269_v0  ;;  %v1818_v18 = vadd.f32 %v1817_v2, %v1816_v6  ;;  %v4930_v2 = vld [vmem:[#allocation36_spill] sm:$0xff] }
 0x4e6   :  { %v2139_v22 = vrot.slane %v2138_v61, 4  ;;  %v1823_v41 = vadd.f32 1e-05, %v1821_v4  ;;  %v4928_v4 = vld [vmem:[#allocation32_spill] sm:$0xff] }
 0x4e7   :  { %v1819_v19 = vrot.slane %v1818_v18, 1  ;;  %v2160_v37 = vrot.slane %v2159_v20, 4 }
 0x4e8   :  { %v2140_v8 = vadd.f32 %v2139_v22, %v2138_v61  ;;  %3019 = vrsqrt.f32 %v1823_v41  ;;  %v4929_v22 = vld [vmem:[#allocation34_spill] sm:$0xff] }
 0x4e9   :  { %v1820_v31 = vadd.f32 %v1819_v19, %v1818_v18  ;;  %v2161_v50 = vadd.f32 %v2160_v37, %v2159_v20 }
 0x4ea   :  { %v2141_v39 = vrot.slane %v2140_v8, 2 }
 0x4eb   :  { %v1822_v46 = vmul.f32 0.0078125, %v1820_v31 }
 0x4ec   :  { %v2142_v43 = vadd.f32 %v2141_v39, %v2140_v8 }
 0x4ed   :  { %v1824_v5 = vadd.f32 1e-05, %v1822_v46 }
 0x4ee   :  { %v2143_v40 = vrot.slane %v2142_v43, 1 }
 0x4ef   :  { %3021 = vrsqrt.f32 %v1824_v5 }
 0x4f0   :  { %v2144_v1 = vadd.f32 %v2143_v40, %v2142_v43 }
 0x4f2   :  { %v2166_v21 = vmul.f32 0.0078125, %v2144_v1  ;;  %v3020_v33 = vpop.eup %3019  ;;  %v4935_v1 = vld [vmem:[#allocation46_spill] sm:$0xff] }
 0x4f3   :  { %v4285_v31 = vmul.f32 %v3020_v33, %v4042_v24  ;;  %v4288_v40 = vmul.f32 %v3020_v33, %v4045_v51  ;;  %v4291_v43 = vmul.f32 %v3020_v33, %v4048_v35  ;;  %v4306_v24 = vmul.f32 %v3020_v33, %v4065_v12 }
 0x4f4   :  { %v4273_v34 = vsub.f32 %v4017_v36, %v2166_v21  ;;  %v4276_v42 = vsub.f32 %v4021_v53, %v2166_v21  ;;  %v4279_v41 = vsub.f32 %v4029_v63, %v2166_v21  ;;  %v4282_v8 = vsub.f32 %v4039_v52, %v2166_v21 }
 0x4f5   :  { %v4294_v36 = vmul.f32 %v3020_v33, %v4051_v38  ;;  %v4297_v53 = vmul.f32 %v3020_v33, %v4056_v44  ;;  %v4300_v63 = vmul.f32 %v3020_v33, %v4059_v7  ;;  %v4303_v52 = vmul.f32 %v3020_v33, %v4062_v11 }
 0x4f6   :  { %4915 = vst [vmem:[#allocation47_spill] sm:$0xff] %v4273_v34  ;;  %4916 = vst [vmem:[#allocation48_spill] sm:$0xff] %v4276_v42  ;;  %v4309_v51 = vmul.f32 %v3020_v33, %v4068_v25  ;;  %v4312_v35 = vmul.f32 %v3020_v33, %v4070_v9  ;;  %v4315_v38 = vmul.f32 %v3020_v33, %v4072_v28  ;;  %v2162_v9 = vrot.slane %v2161_v50, 2 }
 0x4f7   :  { %4917 = vst [vmem:[#allocation49_spill] sm:$0xff] %v4279_v41  ;;  %4918 = vst [vmem:[#allocation50_spill] sm:$0xff] %v4282_v8  ;;  %v4318_v44 = vmul.f32 %v3020_v33, %v4074_v10  ;;  %v4321_v7 = vmul.f32 %v3020_v33, %v4076_v32  ;;  %v4324_v11 = vmul.f32 %v3020_v33, %v4078_v62 }
 0x4f8   :  { %v4327_v12 = vmul.f32 %v3020_v33, %v4080_v55  ;;  %v4330_v25 = vmul.f32 %v3020_v33, %v4082_v23  ;;  %v2163_v61 = vadd.f32 %v2162_v9, %v2161_v50  ;;  %v4399_v18 = vsub.f32 %v4930_v2, %v2166_v21 }
 0x4f9   :  { %v3022_v5 = vpop.eup %3021  ;;  %v4414_v50 = vsub.f32 %v4935_v1, %v2166_v21  ;;  %v2200_v33 = vmul.f32 %v4273_v34, %v4273_v34  ;;  %v2202_v9 = vmul.f32 %v4276_v42, %v4276_v42 }
 0x4fa   :  { %v4333_v28 = vmul.f32 %v3022_v5, %v4099_v45  ;;  %v4336_v10 = vmul.f32 %v3022_v5, %v4102_v27  ;;  %v4339_v32 = vmul.f32 %v3022_v5, %v4105_v29  ;;  %v4342_v62 = vmul.f32 %v3022_v5, %v4110_v49 }
 0x4fb   :  { %v4345_v55 = vmul.f32 %v3022_v5, %v4113_v57  ;;  %v4348_v23 = vmul.f32 %v3022_v5, %v4116_v14  ;;  %v4351_v6 = vmul.f32 %v3022_v5, %v4119_v47  ;;  %v4354_v45 = vmul.f32 %v3022_v5, %v4122_v13 }
 0x4fc   :  { %v4357_v27 = vmul.f32 %v3022_v5, %v4125_v26  ;;  %v4360_v29 = vmul.f32 %v3022_v5, %v4128_v60  ;;  %v4363_v49 = vmul.f32 %v3022_v5, %v4131_v30  ;;  %v4366_v57 = vmul.f32 %v3022_v5, %v4134_v54 }
 0x4fd   :  { %v4369_v14 = vmul.f32 %v3022_v5, %v4137_v58  ;;  %v4372_v47 = vmul.f32 %v3022_v5, %v4140_v59  ;;  %v4375_v13 = vmul.f32 %v3022_v5, %v4147_v16  ;;  %v4378_v26 = vmul.f32 %v3022_v5, %v4150_v3 }
 0x4fe   :  { %4919 = vst [vmem:[#allocation51_spill] sm:$0xff] %v4360_v29  ;;  %4920 = vst [vmem:[#allocation52_spill] sm:$0xff] %v4363_v49  ;;  %v2164_v60 = vrot.slane %v2163_v61, 1  ;;  %v4381_v30 = vsub.f32 %v4084_v48, %v2166_v21  ;;  %v4384_v54 = vsub.f32 %v4096_v56, %v2166_v21  ;;  %v4387_v58 = vsub.f32 %v4142_v15, %v2166_v21  ;;  %v4931_v48 = vld [vmem:[#allocation38_spill] sm:$0xff]  ;;  %v4932_v56 = vld [vmem:[#allocation40_spill] sm:$0xff] }
 0x4ff   :  { %4921 = vst [vmem:[#allocation53_spill] sm:$0xff] %v4366_v57  ;;  %4922 = vst [vmem:[#allocation54_spill] sm:$0xff] %v4369_v14  ;;  %v4390_v59 = vsub.f32 %v4160_v17, %v2166_v21  ;;  %v4393_v16 = vsub.f32 %v4928_v4, %v2166_v21  ;;  %v4396_v3 = vsub.f32 %v4929_v22, %v2166_v21  ;;  %v4933_v15 = vld [vmem:[#allocation42_spill] sm:$0xff]  ;;  %v4934_v17 = vld [vmem:[#allocation44_spill] sm:$0xff] }
 0x500   :  { %4923 = vst [vmem:[#allocation55_spill] sm:$0xff] %v4372_v47  ;;  %4924 = vst [vmem:[#allocation56_spill] sm:$0xff] %v4375_v13  ;;  %v2165_v20 = vadd.f32 %v2164_v60, %v2163_v61  ;;  %v4402_v39 = vsub.f32 %v4931_v48, %v2166_v21  ;;  %v4405_v19 = vsub.f32 %v4932_v56, %v2166_v21  ;;  %v4936_v22 = vld [vmem:[#allocation24_spill] sm:$0xff]  ;;  %v4938_v48 = vld [vmem:[#allocation25_spill] sm:$0xff] }
 0x501   :  { %4925 = vst [vmem:[#allocation57_spill] sm:$0xff] %v4378_v26  ;;  %4926 = vst [vmem:[#allocation58_spill] sm:$0xff] %v4381_v30  ;;  %v4408_v46 = vsub.f32 %v4933_v15, %v2166_v21  ;;  %v4411_v37 = vsub.f32 %v4934_v17, %v2166_v21  ;;  %v2204_v61 = vmul.f32 %v4279_v41, %v4279_v41  ;;  %v4940_v56 = vld [vmem:[#allocation26_spill] sm:$0xff]  ;;  %v4941_v17 = vld [vmem:[#allocation27_spill] sm:$0xff] }
 0x502   :  { %4927 = vst [vmem:[#allocation59_spill] sm:$0xff] %v4384_v54  ;;  %v2167_v5 = vmul.f32 0.0078125, %v2165_v20  ;;  %v2206_v60 = vmul.f32 %v4282_v8, %v4282_v8  ;;  %v2232_v4 = vadd.f32 %v2202_v9, %v2200_v33  ;;  %v4942_v20 = vld [vmem:[#allocation28_spill] sm:$0xff]  ;;  %v4943_v41 = vld [vmem:[#allocation29_spill] sm:$0xff]  ;;  %v4944_v8 = vld [vmem:[#allocation30_spill] sm:$0xff] }
 0x504   :  { %v4425_v2 = vsub.f32 %v4936_v22, %v2167_v5  ;;  %v4428_v21 = vsub.f32 %v4938_v48, %v2167_v5  ;;  %v4431_v15 = vsub.f32 %v4940_v56, %v2167_v5  ;;  %v4434_v1 = vsub.f32 %v4941_v17, %v2167_v5  ;;  %v4946_v22 = vld [vmem:[#allocation31_spill] sm:$0xff]  ;;  %v4948_v48 = vld [vmem:[#allocation33_spill] sm:$0xff] }
 0x505   :  { %v4437_v42 = vsub.f32 %v4942_v20, %v2167_v5  ;;  %v4440_v34 = vsub.f32 %v4943_v41, %v2167_v5  ;;  %v4443_v33 = vsub.f32 %v4944_v8, %v2167_v5  ;;  %v2233_v9 = vadd.f32 %v2232_v4, %v2204_v61  ;;  %v4950_v56 = vld [vmem:[#allocation35_spill] sm:$0xff]  ;;  %v4952_v17 = vld [vmem:[#allocation37_spill] sm:$0xff] }
 0x506   :  { %4937 = vst [vmem:[#allocation32_spill] sm:$0xff] %v4425_v2  ;;  %4939 = vst [vmem:[#allocation34_spill] sm:$0xff] %v4428_v21  ;;  %v4446_v26 = vsub.f32 %v4946_v22, %v2167_v5  ;;  %v4449_v13 = vsub.f32 %v4948_v48, %v2167_v5  ;;  %v4452_v47 = vsub.f32 %v4950_v56, %v2167_v5  ;;  %v4954_v20 = vld [vmem:[#allocation39_spill] sm:$0xff]  ;;  %v4956_v41 = vld [vmem:[#allocation41_spill] sm:$0xff] }
 0x507   :  { %4945 = vst [vmem:[#allocation36_spill] sm:$0xff] %v4443_v33  ;;  %v4455_v14 = vsub.f32 %v4952_v17, %v2167_v5  ;;  %v4458_v57 = vsub.f32 %v4954_v20, %v2167_v5  ;;  %v4461_v49 = vsub.f32 %v4956_v41, %v2167_v5  ;;  %v4958_v8 = vld [vmem:[#allocation43_spill] sm:$0xff]  ;;  %v2208_v4 = vmul.f32 %v4381_v30, %v4381_v30  ;;  %v4960_v48 = vld [vmem:[#allocation45_spill] sm:$0xff] }
 0x508   :  { %4947 = vst [vmem:[#allocation38_spill] sm:$0xff] %v4446_v26  ;;  %4949 = vst [vmem:[#allocation40_spill] sm:$0xff] %v4449_v13  ;;  %v4464_v61 = vsub.f32 %v4958_v8, %v2167_v5  ;;  %v2234_v22 = vadd.f32 %v2233_v9, %v2206_v60  ;;  %v4469_v29 = vsub.f32 %v4960_v48, %v2167_v5 }
 0x509   :  { %4951 = vst [vmem:[#allocation42_spill] sm:$0xff] %v4452_v47  ;;  %4953 = vst [vmem:[#allocation44_spill] sm:$0xff] %v4455_v14  ;;  %v4472_v56 = vsub.f32 %v4269_v0, %v2167_v5  ;;  %v2201_v17 = vmul.f32 %v4425_v2, %v4425_v2  ;;  %v2203_v20 = vmul.f32 %v4428_v21, %v4428_v21 }
 0x50a   :  { %4955 = vst [vmem:[#allocation46_spill] sm:$0xff] %v4458_v57  ;;  %4957 = vst [vmem:[#allocation24_spill] sm:$0xff] %v4461_v49  ;;  %v2210_v41 = vmul.f32 %v4384_v54, %v4384_v54  ;;  %v2235_v8 = vadd.f32 %v2234_v22, %v2208_v4  ;;  %v2212_v30 = vmul.f32 %v4387_v58, %v4387_v58 }
 0x50b   :  { %4959 = vst [vmem:[#allocation25_spill] sm:$0xff] %v4464_v61  ;;  %4961 = vst [vmem:[#allocation26_spill] sm:$0xff] %v4469_v29  ;;  %v2205_v9 = vmul.f32 %v4431_v15, %v4431_v15  ;;  %v2253_v48 = vadd.f32 %v2203_v20, %v2201_v17  ;;  %v2214_v0 = vmul.f32 %v4390_v59, %v4390_v59 }
 0x50c   :  { %v2236_v60 = vadd.f32 %v2235_v8, %v2210_v41  ;;  %v2207_v2 = vmul.f32 %v4434_v1, %v4434_v1  ;;  %v2216_v54 = vmul.f32 %v4393_v16, %v4393_v16  ;;  %v2209_v22 = vmul.f32 %v4437_v42, %v4437_v42 }
 0x50d   :  { %v2254_v21 = vadd.f32 %v2253_v48, %v2205_v9  ;;  %v2218_v8 = vmul.f32 %v4396_v3, %v4396_v3  ;;  %v2211_v20 = vmul.f32 %v4440_v34, %v4440_v34  ;;  %v2213_v48 = vmul.f32 %v4443_v33, %v4443_v33 }
 0x50e   :  { %v2237_v5 = vadd.f32 %v2236_v60, %v2212_v30  ;;  %v2220_v60 = vmul.f32 %v4399_v18, %v4399_v18 }
 0x50f   :  { %v2255_v41 = vadd.f32 %v2254_v21, %v2207_v2  ;;  %v2215_v21 = vmul.f32 %v4446_v26, %v4446_v26 }
 0x510   :  { %v2238_v4 = vadd.f32 %v2237_v5, %v2214_v0  ;;  %v2222_v5 = vmul.f32 %v4402_v39, %v4402_v39 }
 0x511   :  { %v2256_v30 = vadd.f32 %v2255_v41, %v2209_v22  ;;  %v1861_v41 = vlaneseq }
 0x512   :  { %v2239_v17 = vadd.f32 %v2238_v4, %v2216_v54  ;;  %v2224_v4 = vmul.f32 %v4405_v19, %v4405_v19 }
 0x513   :  { %v2257_v0 = vadd.f32 %v2256_v30, %v2211_v20  ;;  %v2226_v20 = vmul.f32 %v4408_v46, %v4408_v46  ;;  %v1862_v26 = vshrl.u32 %v1861_v41, 7  ;;  %v1859_v41 = vld [vmem:[%s4846_s8] sm:$0x3]  ;;  %s3266_s8 = smov [#allocation17]  }
 0x514   :  { %v2240_v9 = vadd.f32 %v2239_v17, %v2218_v8  ;;  %v2217_v8 = vmul.f32 %v4449_v13, %v4449_v13 }
 0x515   :  { %v2258_v54 = vadd.f32 %v2257_v0, %v2213_v48  ;;  %v2228_v48 = vmul.f32 %v4411_v37, %v4411_v37 }
 0x516   :  { %v2241_v2 = vadd.f32 %v2240_v9, %v2220_v60  ;;  %v2219_v60 = vmul.f32 %v4452_v47, %v4452_v47  ;;  %v1863_v47 = vsub.s32 0, %v1862_v26 }
 0x517   :  { %v2259_v17 = vadd.f32 %v2258_v54, %v2215_v21  ;;  %v2230_v21 = vmul.f32 %v4414_v50, %v4414_v50 }
 0x518   :  { %v2242_v22 = vadd.f32 %v2241_v2, %v2222_v5  ;;  %v2221_v5 = vmul.f32 %v4455_v14, %v4455_v14 }
 0x519   :  { %v2260_v9 = vadd.f32 %v2259_v17, %v2217_v8  ;;  %v2225_v8 = vmul.f32 %v4461_v49, %v4461_v49 }
 0x51a   :  { %v2243_v30 = vadd.f32 %v2242_v22, %v2224_v4  ;;  %v2223_v4 = vmul.f32 %v4458_v57, %v4458_v57 }
 0x51b   :  { %v2261_v2 = vadd.f32 %v2260_v9, %v2219_v60  ;;  %v1867_v60 = vsub.s32 1, %v1862_v26  ;;  %v2227_v9 = vmul.f32 %v4464_v61, %v4464_v61 }
 0x51c   :  { %v2244_v0 = vadd.f32 %v2243_v30, %v2226_v20  ;;  %v1903_v30 = vld [vmem:[%s4847_s9] sm:$0x3]  ;;  %s2501_s9 = sshll.u32 %s3266_s8, 4  ;;  %s2502_s9 = int_to_ptr.vmem [resolvable:$true] %s2501_s9 }
 0x51d   :  { %v2262_v22 = vadd.f32 %v2261_v2, %v2221_v5  ;;  %v1864_v5 = vrot.slane %v1859_v41, %v1863_v47  ;;  %v2312_v2 = vld [vmem:[%s4849_s11] sm:$0x3]  ;;  %v4535_v57 = vrot.slane %v1859_v41, %v1867_v60  ;;  %v4537_v26 = vrot.slane %v1903_v30, %v1867_v60  ;;  %s3219_s11 = scalar_lea.vmem %s2502_s9, 4096  ;;  %p3224_p9 = scmp.lt.s32.totalorder %s2502_s9, %s2502_s9 }
 0x51e   :  { %v2245_v54 = vadd.f32 %v2244_v0, %v2228_v48  ;;  %v4545_v14 = vrot.slane %v2312_v2, %v1867_v60  ;;  %p3220_p8 = scmp.ne.s32.totalorder %s2502_s9, %s3219_s11  ;;  %p3225_p10 = scmp.lt.s32.totalorder %s3219_s11, %s3219_s11 }
 0x51f   :  { %v2263_v17 = vadd.f32 %v2262_v22, %v2223_v4  ;;  %v1908_v22 = vrot.slane %v1903_v30, %v1863_v47  ;;  %v1875_v30 = vmul.f32 %v1864_v5, %v4291_v43  ;;  %v1877_v33 = vmul.f32 %v1864_v5, %v4294_v36 }
 0x520   :  { %v2246_v13 = vadd.f32 %v2245_v54, %v2230_v21  ;;  %v2356_v21 = vld [vmem:[#allocation15] sm:$0x3]  ;;  %v2229_v54 = vmul.f32 %v4469_v29, %v4469_v29  ;;  %v1871_v29 = vmul.f32 %v1864_v5, %v4285_v31  ;;  %v1887_v31 = vmul.f32 %v1864_v5, %v4309_v51  ;;  %p3226_p11 = por %p3225_p10, %p3224_p9 }
 0x521   :  { %v2264_v48 = vadd.f32 %v2263_v17, %v2225_v8  ;;  %v2231_v8 = vmul.f32 %v4472_v56, %v4472_v56  ;;  %v4543_v61 = vrot.slane %v2356_v21, %v1863_v47  ;;  %v4549_v41 = vrot.slane %v2356_v21, %v1867_v60 }
 0x522   :  { %v2247_v20 = vrot.slane %v2246_v13, 4  ;;  %v1891_v60 = vmul.f32 %v1864_v5, %v4315_v38  ;;  %v1893_v43 = vmul.f32 %v1864_v5, %v4318_v44  ;;  %v1895_v36 = vmul.f32 %v1864_v5, %v4321_v7  ;;  %p3227_p12 = pnand %p3226_p11, %p3220_p8 }
 0x523   :  { %v2265_v4 = vadd.f32 %v2264_v48, %v2227_v9  ;;  %v1873_v9 = vmul.f32 %v1864_v5, %v4288_v40  ;;  %v1889_v40 = vmul.f32 %v1864_v5, %v4312_v35  ;;  %v4569_v35 = vadd.f32 %v1908_v22, %v1875_v30 }
 0x524   :  { %v2248_v0 = vadd.f32 %v2247_v20, %v2246_v13  ;;  %v4541_v20 = vrot.slane %v2312_v2, %v1863_v47  ;;  %v1883_v47 = vmul.f32 %v1864_v5, %v4303_v52  ;;  %v1885_v2 = vmul.f32 %v1864_v5, %v4306_v24 }
 0x525   :  { %v2266_v13 = vadd.f32 %v2265_v4, %v2229_v54  ;;  %v1879_v54 = vmul.f32 %v1864_v5, %v4297_v53  ;;  %v1897_v53 = vmul.f32 %v1864_v5, %v4324_v11  ;;  %v1901_v52 = vmul.f32 %v1864_v5, %v4330_v25 }
 0x526   :  { %v2249_v49 = vrot.slane %v2248_v0, 2  ;;  %v4565_v24 = vadd.f32 %v1908_v22, %v1871_v29  ;;  %v4567_v51 = vadd.f32 %v1908_v22, %v1873_v9  ;;  %v4571_v38 = vadd.f32 %v1908_v22, %v1877_v33 }
 0x527   :  { %v2267_v48 = vadd.f32 %v2266_v13, %v2231_v8  ;;  %v4573_v44 = vadd.f32 %v1908_v22, %v1879_v54  ;;  %v4577_v11 = vadd.f32 %v1908_v22, %v1883_v47  ;;  %v4581_v25 = vadd.f32 %v1908_v22, %v1887_v31 }
 0x528   :  { %v2250_v17 = vadd.f32 %v2249_v49, %v2248_v0  ;;  %v1881_v0 = vmul.f32 %v1864_v5, %v4300_v63  ;;  %v1899_v63 = vmul.f32 %v1864_v5, %v4327_v12  ;;  %v4579_v12 = vadd.f32 %v1908_v22, %v1885_v2 }
 0x529   :  { %v2268_v4 = vrot.slane %v2267_v48, 4  ;;  %v4583_v29 = vadd.f32 %v1908_v22, %v1889_v40  ;;  %v4585_v9 = vadd.f32 %v1908_v22, %v1891_v60  ;;  %v4587_v30 = vadd.f32 %v1908_v22, %v1893_v43 }
 0x52a   :  { %v2251_v49 = vrot.slane %v2250_v17, 1  ;;  %v4575_v7 = vadd.f32 %v1908_v22, %v1881_v0  ;;  %v4589_v33 = vadd.f32 %v1908_v22, %v1895_v36  ;;  %v4591_v54 = vadd.f32 %v1908_v22, %v1897_v53 }
 0x52b   :  { %v2269_v8 = vadd.f32 %v2268_v4, %v2267_v48  ;;  %v4595_v0 = vadd.f32 %v1908_v22, %v1901_v52  ;;  %v1872_v2 = vmul.f32 %v4535_v57, %v4333_v28  ;;  %v1874_v4 = vmul.f32 %v4535_v57, %v4336_v10 }
 0x52c   :  { %v2252_v21 = vadd.f32 %v2251_v49, %v2250_v17  ;;  %v4593_v49 = vadd.f32 %v1908_v22, %v1899_v63  ;;  %v1876_v31 = vmul.f32 %v4535_v57, %v4339_v32  ;;  %v1878_v40 = vmul.f32 %v4535_v57, %v4342_v62  ;;  %v4962_v32 = vld [vmem:[#allocation51_spill] sm:$0xff]  ;;  %v4963_v62 = vld [vmem:[#allocation52_spill] sm:$0xff] }
 0x52d   :  { %v2270_v17 = vrot.slane %v2269_v8, 2  ;;  %v1880_v60 = vmul.f32 %v4535_v57, %v4345_v55  ;;  %v1882_v22 = vmul.f32 %v4535_v57, %v4348_v23  ;;  %v1886_v28 = vmul.f32 %v4535_v57, %v4354_v45  ;;  %v4964_v55 = vld [vmem:[#allocation53_spill] sm:$0xff]  ;;  %v4965_v23 = vld [vmem:[#allocation54_spill] sm:$0xff]  ;;  %v4967_v45 = vld [vmem:[#allocation56_spill] sm:$0xff] }
 0x52e   :  { %v2274_v13 = vmul.f32 0.0078125, %v2252_v21  ;;  %v1884_v21 = vmul.f32 %v4535_v57, %v4351_v6  ;;  %v1888_v10 = vmul.f32 %v4535_v57, %v4357_v27  ;;  %v1890_v36 = vmul.f32 %v4535_v57, %v4962_v32  ;;  %v4966_v6 = vld [vmem:[#allocation55_spill] sm:$0xff]  ;;  %v4968_v27 = vld [vmem:[#allocation57_spill] sm:$0xff] }
 0x52f   :  { %v2271_v5 = vadd.f32 %v2270_v17, %v2269_v8  ;;  %v1892_v53 = vmul.f32 %v4535_v57, %v4963_v62  ;;  %v1894_v8 = vmul.f32 %v4535_v57, %v4964_v55  ;;  %v1896_v63 = vmul.f32 %v4535_v57, %v4965_v23 }
 0x530   :  { %v2276_v48 = vadd.f32 1e-05, %v2274_v13  ;;  %v1898_v52 = vmul.f32 %v4535_v57, %v4966_v6  ;;  %v1900_v17 = vmul.f32 %v4535_v57, %v4967_v45  ;;  %v4636_v32 = vadd.f32 %v4537_v26, %v1876_v31 }
 0x531   :  { %v2272_v47 = vrot.slane %v2271_v5, 1  ;;  %v4639_v62 = vadd.f32 %v4537_v26, %v1878_v40  ;;  %v4645_v23 = vadd.f32 %v4537_v26, %v1882_v22  ;;  %v4657_v31 = vadd.f32 %v4537_v26, %v1890_v36  ;;  %v4974_v36 = vld [vmem:[#allocation47_spill] sm:$0xff] }
 0x532   :  { %3023 = vrsqrt.f32 %v2276_v48  ;;  %v1902_v48 = vmul.f32 %v4535_v57, %v4968_v27  ;;  %v4648_v57 = vadd.f32 %v4537_v26, %v1884_v21  ;;  %v4660_v40 = vadd.f32 %v4537_v26, %v1892_v53 }
 0x533   :  { %v2273_v43 = vadd.f32 %v2272_v47, %v2271_v5  ;;  %v4630_v5 = vadd.f32 %v4537_v26, %v1872_v2  ;;  %v4633_v47 = vadd.f32 %v4537_v26, %v1874_v4  ;;  %v4651_v2 = vadd.f32 %v4537_v26, %v1886_v28  ;;  %4969 = vst [vmem:[#allocation27_spill] sm:$0xff] %v4657_v31  ;;  %v4979_v31 = vld [vmem:[#allocation59_spill] sm:$0xff] }
 0x534   :  { %v4654_v4 = vadd.f32 %v4537_v26, %v1888_v10  ;;  %4970 = vst [vmem:[#allocation28_spill] sm:$0xff] %v4660_v40  ;;  %v4666_v22 = vadd.f32 %v4537_v26, %v1896_v63  ;;  %v4669_v6 = vadd.f32 %v4537_v26, %v1898_v52  ;;  %v4672_v28 = vadd.f32 %v4537_v26, %v1900_v17 }
 0x535   :  { %v2275_v13 = vmul.f32 0.0078125, %v2273_v43  ;;  %v4642_v43 = vadd.f32 %v4537_v26, %v1880_v60  ;;  %v4663_v60 = vadd.f32 %v4537_v26, %v1894_v8  ;;  %v4675_v10 = vadd.f32 %v4537_v26, %v1902_v48  ;;  %v4976_v8 = vld [vmem:[#allocation49_spill] sm:$0xff] }
 0x536   :  { %4972 = vst [vmem:[#allocation30_spill] sm:$0xff] %v4666_v22  ;;  %4973 = vst [vmem:[#allocation31_spill] sm:$0xff] %v4669_v6  ;;  %v4978_v22 = vld [vmem:[#allocation58_spill] sm:$0xff] }
 0x537   :  { %v2277_v55 = vadd.f32 1e-05, %v2275_v13  ;;  %4971 = vst [vmem:[#allocation29_spill] sm:$0xff] %v4663_v60  ;;  %v4975_v13 = vld [vmem:[#allocation48_spill] sm:$0xff]  ;;  %v4977_v60 = vld [vmem:[#allocation50_spill] sm:$0xff] }
 0x539   :  { %3025 = vrsqrt.f32 %v2277_v55 }
 0x53c   :  { %v3024_v21 = vpop.eup %3023 }
 0x53d   :  { %v2280_v53 = vmul.f32 %v3024_v21, %v4974_v36  ;;  %v2282_v45 = vmul.f32 %v3024_v21, %v4975_v13  ;;  %v2284_v27 = vmul.f32 %v3024_v21, %v4976_v8  ;;  %v2286_v63 = vmul.f32 %v3024_v21, %v4977_v60 }
 0x53e   :  { %v2288_v40 = vmul.f32 %v3024_v21, %v4978_v22  ;;  %v2290_v52 = vmul.f32 %v3024_v21, %v4979_v31  ;;  %v2292_v6 = vmul.f32 %v3024_v21, %v4387_v58  ;;  %v2294_v17 = vmul.f32 %v3024_v21, %v4390_v59 }
 0x53f   :  { %v2296_v26 = vmul.f32 %v3024_v21, %v4393_v16  ;;  %v2298_v48 = vmul.f32 %v3024_v21, %v4396_v3  ;;  %v2300_v55 = vmul.f32 %v3024_v21, %v4399_v18  ;;  %v2302_v36 = vmul.f32 %v3024_v21, %v4402_v39 }
 0x540   :  { %v2304_v13 = vmul.f32 %v3024_v21, %v4405_v19  ;;  %v2306_v60 = vmul.f32 %v3024_v21, %v4408_v46  ;;  %v2308_v22 = vmul.f32 %v3024_v21, %v4411_v37  ;;  %v2310_v31 = vmul.f32 %v3024_v21, %v4414_v50 }
 0x541   :  { %v2324_v58 = vmul.f32 %v4541_v20, %v2280_v53  ;;  %v2326_v59 = vmul.f32 %v4541_v20, %v2282_v45  ;;  %v2328_v16 = vmul.f32 %v4541_v20, %v2284_v27  ;;  %v2330_v3 = vmul.f32 %v4541_v20, %v2286_v63 }
 0x542   :  { %v2332_v18 = vmul.f32 %v4541_v20, %v2288_v40  ;;  %v2334_v39 = vmul.f32 %v4541_v20, %v2290_v52  ;;  %v2336_v19 = vmul.f32 %v4541_v20, %v2292_v6  ;;  %v2338_v46 = vmul.f32 %v4541_v20, %v2294_v17 }
 0x543   :  { %v2340_v37 = vmul.f32 %v4541_v20, %v2296_v26  ;;  %v2342_v50 = vmul.f32 %v4541_v20, %v2298_v48  ;;  %v2344_v21 = vmul.f32 %v4541_v20, %v2300_v55  ;;  %v2346_v53 = vmul.f32 %v4541_v20, %v2302_v36  ;;  %v4713_v26 = vpop.eup %3025 }
 0x544   :  { %v2348_v45 = vmul.f32 %v4541_v20, %v2304_v13  ;;  %v2350_v8 = vmul.f32 %v4541_v20, %v2306_v60  ;;  %v2352_v40 = vmul.f32 %v4541_v20, %v2308_v22  ;;  %v2354_v27 = vmul.f32 %v4541_v20, %v2310_v31 }
 0x545   :  { %v2368_v6 = vadd.f32 %v4543_v61, %v2324_v58  ;;  %v2370_v63 = vadd.f32 %v4543_v61, %v2326_v59  ;;  %v2372_v52 = vadd.f32 %v4543_v61, %v2328_v16  ;;  %v2374_v17 = vadd.f32 %v4543_v61, %v2330_v3 }
 0x546   :  { %v2376_v48 = vadd.f32 %v4543_v61, %v2332_v18  ;;  %v2378_v55 = vadd.f32 %v4543_v61, %v2334_v39  ;;  %v2380_v36 = vadd.f32 %v4543_v61, %v2336_v19  ;;  %v2382_v13 = vadd.f32 %v4543_v61, %v2338_v46 }
 0x547   :  { %v2384_v20 = vadd.f32 %v4543_v61, %v2340_v37  ;;  %v2386_v60 = vadd.f32 %v4543_v61, %v2342_v50  ;;  %v2388_v22 = vadd.f32 %v4543_v61, %v2344_v21  ;;  %v2390_v31 = vadd.f32 %v4543_v61, %v2346_v53 }
 0x548   :  { %v2392_v58 = vadd.f32 %v4543_v61, %v2348_v45  ;;  %v2394_v59 = vadd.f32 %v4543_v61, %v2350_v8  ;;  %v2396_v16 = vadd.f32 %v4543_v61, %v2352_v40  ;;  %v2398_v3 = vadd.f32 %v4543_v61, %v2354_v27 }
 0x549   :  { %v2400_v18 = vadd.f32 %v2368_v6, %v4565_v24  ;;  %v2402_v39 = vadd.f32 %v2370_v63, %v4567_v51  ;;  %v2404_v19 = vadd.f32 %v2372_v52, %v4569_v35  ;;  %v2406_v46 = vadd.f32 %v2374_v17, %v4571_v38  ;;  %v4980_v17 = vld [vmem:[#allocation32_spill] sm:$0xff] }
 0x54a   :  { %v2408_v37 = vadd.f32 %v2376_v48, %v4573_v44  ;;  %v2410_v50 = vadd.f32 %v2378_v55, %v4575_v7  ;;  %v2412_v21 = vadd.f32 %v2380_v36, %v4577_v11  ;;  %v2414_v53 = vadd.f32 %v2382_v13, %v4579_v12  ;;  %v4981_v55 = vld [vmem:[#allocation34_spill] sm:$0xff] }
 0x54b   :  { %v2416_v45 = vadd.f32 %v2384_v20, %v4581_v25  ;;  %v2418_v61 = vadd.f32 %v2386_v60, %v4583_v29  ;;  %v2420_v24 = vadd.f32 %v2388_v22, %v4585_v9  ;;  %v2422_v51 = vadd.f32 %v2390_v31, %v4587_v30  ;;  %v4982_v31 = vld [vmem:[#allocation36_spill] sm:$0xff] }
 0x54c   :  { %v2424_v35 = vadd.f32 %v2392_v58, %v4589_v33  ;;  %v2426_v38 = vadd.f32 %v2394_v59, %v4591_v54  ;;  %v2428_v44 = vadd.f32 %v2396_v16, %v4593_v49  ;;  %v2430_v7 = vadd.f32 %v2398_v3, %v4595_v0  ;;  %v4983_v59 = vld [vmem:[#allocation38_spill] sm:$0xff] }
 0x54d   :  { %v2432_v8 = vmax.f32 %v2400_v18, 0.0  ;;  %v2434_v11 = vmax.f32 %v2402_v39, 0.0  ;;  %v2436_v40 = vmax.f32 %v2404_v19, 0.0  ;;  %v2438_v12 = vmax.f32 %v2406_v46, 0.0  ;;  %v4986_v39 = vld [vmem:[#allocation44_spill] sm:$0xff]  ;;  %v4987_v46 = vld [vmem:[#allocation46_spill] sm:$0xff] }
 0x54e   :  { %v2440_v27 = vmax.f32 %v2408_v37, 0.0  ;;  %v2442_v25 = vmax.f32 %v2410_v50, 0.0  ;;  %v2444_v6 = vmax.f32 %v2412_v21, 0.0  ;;  %v2446_v29 = vmax.f32 %v2414_v53, 0.0  ;;  %v4988_v37 = vld [vmem:[#allocation24_spill] sm:$0xff]  ;;  %v4989_v50 = vld [vmem:[#allocation25_spill] sm:$0xff] }
 0x54f   :  { %v2448_v63 = vmax.f32 %v2416_v45, 0.0  ;;  %v2450_v9 = vmax.f32 %v2418_v61, 0.0  ;;  %v2452_v52 = vmax.f32 %v2420_v24, 0.0  ;;  %v2454_v30 = vmax.f32 %v2422_v51, 0.0  ;;  %2464 = vst [vmem:[#allocation17] sm:$0xff] %v2432_v8  ;;  %2466 = vst [vmem:[#allocation17 + $0x10] sm:$0xff] %v2434_v11 }
 0x550   :  { %2468 = vst [vmem:[#allocation17 + $0x20] sm:$0xff] %v2436_v40  ;;  %2470 = vst [vmem:[#allocation17 + $0x30] sm:$0xff] %v2438_v12  ;;  %v2456_v33 = vmax.f32 %v2424_v35, 0.0  ;;  %v2458_v54 = vmax.f32 %v2426_v38, 0.0  ;;  %v2460_v49 = vmax.f32 %v2428_v44, 0.0  ;;  %v2462_v0 = vmax.f32 %v2430_v7, 0.0 }
 0x551   :  { %2472 = vst [vmem:[#allocation17 + $0x40] sm:$0xff] %v2440_v27  ;;  %2474 = vst [vmem:[#allocation17 + $0x50] sm:$0xff] %v2442_v25  ;;  %v2281_v48 = vmul.f32 %v4713_v26, %v4980_v17  ;;  %v2283_v36 = vmul.f32 %v4713_v26, %v4981_v55  ;;  %v2285_v13 = vmul.f32 %v4713_v26, %v4431_v15  ;;  %v4984_v15 = vld [vmem:[#allocation40_spill] sm:$0xff]  ;;  %v4990_v53 = vld [vmem:[#allocation26_spill] sm:$0xff] }
 0x552   :  { %2476 = vst [vmem:[#allocation17 + $0x60] sm:$0xff] %v2444_v6  ;;  %2478 = vst [vmem:[#allocation17 + $0x70] sm:$0xff] %v2446_v29  ;;  %v2287_v20 = vmul.f32 %v4713_v26, %v4434_v1  ;;  %v2289_v60 = vmul.f32 %v4713_v26, %v4437_v42  ;;  %v2291_v22 = vmul.f32 %v4713_v26, %v4440_v34  ;;  %v4985_v1 = vld [vmem:[#allocation42_spill] sm:$0xff] }
 0x553   :  { %2480 = vst [vmem:[#allocation17 + $0x80] sm:$0xff] %v2448_v63  ;;  %2482 = vst [vmem:[#allocation17 + $0x90] sm:$0xff] %v2450_v9  ;;  %v2293_v58 = vmul.f32 %v4713_v26, %v4982_v31  ;;  %v2295_v16 = vmul.f32 %v4713_v26, %v4983_v59  ;;  %v2297_v3 = vmul.f32 %v4713_v26, %v4984_v15 }
 0x554   :  { %2484 = vst [vmem:[#allocation17 + $0xa0] sm:$0xff] %v2452_v52  ;;  %2486 = vst [vmem:[#allocation17 + $0xb0] sm:$0xff] %v2454_v30  ;;  %v2299_v18 = vmul.f32 %v4713_v26, %v4985_v1  ;;  %v2301_v19 = vmul.f32 %v4713_v26, %v4986_v39  ;;  %v2303_v42 = vmul.f32 %v4713_v26, %v4987_v46  ;;  %v4991_v39 = vld [vmem:[#allocation27_spill] sm:$0xff]  ;;  %v4993_v46 = vld [vmem:[#allocation29_spill] sm:$0xff] }
 0x555   :  { %2488 = vst [vmem:[#allocation17 + $0xc0] sm:$0xff] %v2456_v33  ;;  %2490 = vst [vmem:[#allocation17 + $0xd0] sm:$0xff] %v2458_v54  ;;  %v2305_v34 = vmul.f32 %v4713_v26, %v4988_v37  ;;  %v2307_v21 = vmul.f32 %v4713_v26, %v4989_v50  ;;  %v2309_v45 = vmul.f32 %v4713_v26, %v4990_v53  ;;  %v4995_v37 = vld [vmem:[#allocation31_spill] sm:$0xff] }
 0x556   :  { %2492 = vst [vmem:[#allocation17 + $0xe0] sm:$0xff] %v2460_v49  ;;  %2494 = vst [vmem:[#allocation17 + $0xf0] sm:$0xff] %v2462_v0  ;;  %v2311_v61 = vmul.f32 %v4713_v26, %v4472_v56  ;;  %v2325_v24 = vmul.f32 %v4545_v14, %v2281_v48  ;;  %v2327_v51 = vmul.f32 %v4545_v14, %v2283_v36 }
 0x557   :  { %v2329_v35 = vmul.f32 %v4545_v14, %v2285_v13  ;;  %v2331_v38 = vmul.f32 %v4545_v14, %v2287_v20  ;;  %v2333_v44 = vmul.f32 %v4545_v14, %v2289_v60  ;;  %v2335_v7 = vmul.f32 %v4545_v14, %v2291_v22 }
 0x558   :  { %v2337_v8 = vmul.f32 %v4545_v14, %v2293_v58  ;;  %v2339_v11 = vmul.f32 %v4545_v14, %v2295_v16  ;;  %v2341_v40 = vmul.f32 %v4545_v14, %v2297_v3  ;;  %v2343_v56 = vmul.f32 %v4545_v14, %v2299_v18 }
 0x559   :  { %v2345_v26 = vmul.f32 %v4545_v14, %v2301_v19  ;;  %v2347_v12 = vmul.f32 %v4545_v14, %v2303_v42  ;;  %v2349_v27 = vmul.f32 %v4545_v14, %v2305_v34  ;;  %v2351_v25 = vmul.f32 %v4545_v14, %v2307_v21  ;;  %v4992_v19 = vld [vmem:[#allocation28_spill] sm:$0xff]  ;;  %v4994_v42 = vld [vmem:[#allocation30_spill] sm:$0xff] }
 0x55a   :  { %v2353_v6 = vmul.f32 %v4545_v14, %v2309_v45  ;;  %v2355_v29 = vmul.f32 %v4545_v14, %v2311_v61  ;;  %v2369_v63 = vadd.f32 %v4549_v41, %v2325_v24  ;;  %v2371_v9 = vadd.f32 %v4549_v41, %v2327_v51 }
 0x55b   :  { %v2373_v52 = vadd.f32 %v4549_v41, %v2329_v35  ;;  %v2375_v30 = vadd.f32 %v4549_v41, %v2331_v38  ;;  %v2377_v33 = vadd.f32 %v4549_v41, %v2333_v44  ;;  %v2379_v54 = vadd.f32 %v4549_v41, %v2335_v7 }
 0x55c   :  { %v2381_v49 = vadd.f32 %v4549_v41, %v2337_v8  ;;  %v2383_v0 = vadd.f32 %v4549_v41, %v2339_v11  ;;  %v2385_v17 = vadd.f32 %v4549_v41, %v2341_v40  ;;  %v2387_v14 = vadd.f32 %v4549_v41, %v2343_v56 }
 0x55d   :  { %v2389_v48 = vadd.f32 %v4549_v41, %v2345_v26  ;;  %v2391_v55 = vadd.f32 %v4549_v41, %v2347_v12  ;;  %v2393_v36 = vadd.f32 %v4549_v41, %v2349_v27  ;;  %v2395_v13 = vadd.f32 %v4549_v41, %v2351_v25 }
 0x55e   :  { %v2397_v20 = vadd.f32 %v4549_v41, %v2353_v6  ;;  %v2399_v60 = vadd.f32 %v4549_v41, %v2355_v29  ;;  %v2401_v22 = vadd.f32 %v2369_v63, %v4630_v5  ;;  %v2403_v31 = vadd.f32 %v2371_v9, %v4633_v47 }
 0x55f   :  { %v2405_v58 = vadd.f32 %v2373_v52, %v4636_v32  ;;  %v2407_v59 = vadd.f32 %v2375_v30, %v4639_v62  ;;  %v2409_v16 = vadd.f32 %v2377_v33, %v4642_v43  ;;  %v2411_v15 = vadd.f32 %v2379_v54, %v4645_v23 }
 0x560   :  { %v2413_v3 = vadd.f32 %v2381_v49, %v4648_v57  ;;  %v2415_v1 = vadd.f32 %v2383_v0, %v4651_v2  ;;  %v2417_v18 = vadd.f32 %v2385_v17, %v4654_v4  ;;  %v2419_v41 = vadd.f32 %v2387_v14, %v4991_v39 }
 0x561   :  { %v2421_v5 = vadd.f32 %v2389_v48, %v4992_v19  ;;  %v2423_v47 = vadd.f32 %v2391_v55, %v4993_v46  ;;  %v2425_v32 = vadd.f32 %v2393_v36, %v4994_v42  ;;  %v2427_v62 = vadd.f32 %v2395_v13, %v4995_v37 }
 0x562   :  { %v2429_v43 = vadd.f32 %v2397_v20, %v4672_v28  ;;  %v2431_v23 = vadd.f32 %v2399_v60, %v4675_v10  ;;  %v2433_v34 = vmax.f32 %v2401_v22, 0.0  ;;  %v2435_v57 = vmax.f32 %v2403_v31, 0.0 }
 0x563   :  { %v2437_v50 = vmax.f32 %v2405_v58, 0.0  ;;  %v2439_v2 = vmax.f32 %v2407_v59, 0.0  ;;  %v2441_v4 = vmax.f32 %v2409_v16, 0.0  ;;  %v2443_v21 = vmax.f32 %v2411_v15, 0.0 }
 0x564   :  { %v2445_v53 = vmax.f32 %v2413_v3, 0.0  ;;  %v2447_v45 = vmax.f32 %v2415_v1, 0.0  ;;  %v2449_v61 = vmax.f32 %v2417_v18, 0.0  ;;  %v2451_v24 = vmax.f32 %v2419_v41, 0.0  ;;  %2465 = vst [vmem:[#allocation17 + $0x8] sm:$0xff] %v2433_v34  ;;  %2467 = vst [vmem:[#allocation17 + $0x18] sm:$0xff] %v2435_v57 }
 0x565   :  { %v2453_v51 = vmax.f32 %v2421_v5, 0.0  ;;  %v2455_v35 = vmax.f32 %v2423_v47, 0.0  ;;  %2469 = vst [vmem:[#allocation17 + $0x28] sm:$0xff] %v2437_v50  ;;  %2471 = vst [vmem:[#allocation17 + $0x38] sm:$0xff] %v2439_v2  ;;  %v2457_v28 = vmax.f32 %v2425_v32, 0.0  ;;  %v2459_v10 = vmax.f32 %v2427_v62, 0.0 }
 0x566   :  { %v2461_v38 = vmax.f32 %v2429_v43, 0.0  ;;  %v2463_v44 = vmax.f32 %v2431_v23, 0.0  ;;  %2473 = vst [vmem:[#allocation17 + $0x48] sm:$0xff] %v2441_v4  ;;  %2475 = vst [vmem:[#allocation17 + $0x58] sm:$0xff] %v2443_v21 }
 0x567   :  { %2477 = vst [vmem:[#allocation17 + $0x68] sm:$0xff] %v2445_v53  ;;  %2479 = vst [vmem:[#allocation17 + $0x78] sm:$0xff] %v2447_v45 }
 0x568   :  { %2481 = vst [vmem:[#allocation17 + $0x88] sm:$0xff] %v2449_v61  ;;  %2483 = vst [vmem:[#allocation17 + $0x98] sm:$0xff] %v2451_v24 }
 0x569   :  { %2485 = vst [vmem:[#allocation17 + $0xa8] sm:$0xff] %v2453_v51  ;;  %2487 = vst [vmem:[#allocation17 + $0xb8] sm:$0xff] %v2455_v35 }
 0x56a   :  { %2489 = vst [vmem:[#allocation17 + $0xc8] sm:$0xff] %v2457_v28  ;;  %2491 = vst [vmem:[#allocation17 + $0xd8] sm:$0xff] %v2459_v10 }
 0x56b   :  { %2493 = vst [vmem:[#allocation17 + $0xe8] sm:$0xff] %v2461_v38  ;;  %2495 = vst [vmem:[#allocation17 + $0xf8] sm:$0xff] %v2463_v44 }
 0x56c   :  { %3230 = shalt.err (!%p3227_p12)
}
 0x56d   :  { %s3231_s20 = scalar_lea.hbm %s4851_s13, 4096 }
 0x56e   :  { %p3232_p13 = scmp.ne.s32.totalorder %s4851_s13, %s3231_s20  ;;  %p3235_p0 = scmp.lt.u32.totalorder %s3231_s20, %s4851_s13 }
 0x570   :  { %p3237_p1 = pnand %p3235_p0, %p3232_p13 }
 0x572   :  { %3240 = shalt.err (!%p3237_p1)
}
 0x573   :  { %2507 = dma.vmem_to_hbm [thread:$0]  %s2502_s9, 4096, %s4851_s13, [#allocation5], %s3256_s5, %s3256_s5, %s3257_s28  }
 0x574   :  { %3251 = dma.done.wait [#allocation5], 4096  }
 0x575   :  { %3252 = vsyncadd [#allocation5], 4294963200 }
 0x576   :  { %2511 = vsyncpa [#allocation4], 1 }
 0x577   :  { %2512 = vsyncpa [#allocation7], 1 }
 0x578   :  { %2513 = vsyncpa [#allocation10], 1 }
 0x579   :  { %2514 = vsyncpa [#allocation13], 1 }
 0x57a   :  { %2515 = vsyncpa [#allocation16], 1 }
 0x57b   :  { %2516 = vsyncpa [#allocation5], 1 }

</bundles_post_ra>
